<compile_context>
chip_gen: v7x
topology: tpu7x:2x2x1
jax: 0.10.0
libtpu: 0.0.40
codegen_flags: <defaults>
</compile_context>

<pallas_src>
import math

import jax
import jax.numpy as jnp
from jax.experimental import pallas as pl
from jax.experimental.pallas import tpu as pltpu

# ---------------- small synthetic config (lane-dense) ----------------
N_MELS   = 128                 # whisper-large-v3: 128
D_MODEL  = 128                 # whisper-large-v3: 1280
N_HEADS  = 2                   # whisper-large-v3: 20
HEAD_DIM = D_MODEL // N_HEADS  # 64, same head_dim as whisper-large-v3
D_FF     = 4 * D_MODEL         # 512 (whisper-large-v3: 5120)
N_LAYERS = 2                   # whisper-large-v3: 32
T_MELS   = 256                 # mel frames into conv1 (whisper: 3000)
T_SEQ    = T_MELS // 2         # after conv2 stride 2 (whisper: 1500) -> 128 (lane-dense)
LN_EPS   = 1e-5
HOP      = 64                  # samples per mel frame in the simplified processor


# ======================= Pallas kernels =======================

def _conv_stack_kernel(xp_ref, w1_ref, b1_ref, w2_ref, b2_ref, pos_ref, o_ref):
    """Fused conv1(k3,s1,p1)+GELU -> conv2(k3,s2,p1)+GELU + positional embedding.

    xp_ref: (1, S+1, 2*C) bf16 pair-packed, zero-padded mel frames:
      xp[s, :C] = x_pad[2s], xp[s, C:] = x_pad[2s+1], with x_pad = [0, mels, 0] in time.
    w1_ref: (3, C, D) bf16, w2_ref: (3, D, D) bf16, biases f32, pos_ref: (S, D) f32.
    o_ref: (1, S, D) bf16.
    """
    S = o_ref.shape[1]
    C = w1_ref.shape[1]
    xp = xp_ref[0]                                     # (S+1, 2C) bf16

    # Contiguous, 128-lane-aligned taps (no im2col, no strided gather).
    # TODO(synk): the s+1 row shift is a sublane-unaligned slice; at this size the
    # relayout copy is tiny — at whisper scale use pltpu.roll / pre-shifted BlockSpec views.
    x0 = xp[:S, :C]            # x_pad[2s]
    x1 = xp[:S, C:]            # x_pad[2s+1]
    x2 = xp[1:S + 1, :C]       # x_pad[2s+2]
    x3 = xp[1:S + 1, C:]       # x_pad[2s+3]

    def conv1_rows(t0, t1, t2):
        a = jnp.dot(t0, w1_ref[0], preferred_element_type=jnp.float32)
        a += jnp.dot(t1, w1_ref[1], preferred_element_type=jnp.float32)
        a += jnp.dot(t2, w1_ref[2], preferred_element_type=jnp.float32)
        # TODO(synk): HF Whisper uses the exact erf GELU; tanh approximation used here.
        return jax.nn.gelu(a + b1_ref[...], approximate=True).astype(jnp.bfloat16)

    h_even = conv1_rows(x0, x1, x2)                    # conv1 out rows 2s     (S, D)
    h_odd = conv1_rows(x1, x2, x3)                     # conv1 out rows 2s+1   (S, D)

    # conv2 stride-2 taps over h1_pad = [0, h1, 0]:
    #   tap0[t] = h1_pad[2t]   = h_odd shifted down by one row (zero first row)
    #   tap1[t] = h1_pad[2t+1] = h_even[t]
    #   tap2[t] = h1_pad[2t+2] = h_odd[t]
    zero_row = jnp.zeros((1, h_odd.shape[1]), jnp.bfloat16)
    tap0 = jnp.concatenate([zero_row, h_odd[:S - 1]], axis=0)

    acc = jnp.dot(tap0, w2_ref[0], preferred_element_type=jnp.float32)
    acc += jnp.dot(h_even, w2_ref[1], preferred_element_type=jnp.float32)
    acc += jnp.dot(h_odd, w2_ref[2], preferred_element_type=jnp.float32)
    acc = jax.nn.gelu(acc + b2_ref[...], approximate=True) + pos_ref[...]
    o_ref[0] = acc.astype(jnp.bfloat16)                # bf16 kernel boundary


def _encoder_stack_kernel(x_ref,
                          ln1g_ref, ln1b_ref,
                          wq_ref, bq_ref, wk_ref, wv_ref, bv_ref, wo_ref, bo_ref,
                          ln2g_ref, ln2b_ref,
                          w1_ref, b1_ref, w2_ref, b2_ref,
                          lnfg_ref, lnfb_ref,
                          o_ref, resid_ref):
    """One grid step = one (batch, layer) pair.  grid=(B, L), L innermost ("arbitrary").
    The residual stream lives in resid_ref (f32 VMEM scratch) across the L axis."""
    l = pl.program_id(1)

    @pl.when(l == 0)
    def _():
        resid_ref[...] = x_ref[0].astype(jnp.float32)

    def layer_norm(v, g, b):                           # f32 math
        mu = jnp.mean(v, axis=-1, keepdims=True)
        var = jnp.mean(jnp.square(v - mu), axis=-1, keepdims=True)
        return (v - mu) * jax.lax.rsqrt(var + LN_EPS) * g + b

    x = resid_ref[...]                                 # (T, D) f32
    hd = HEAD_DIM

    # ---- self-attention block (pre-LN) ----
    h = layer_norm(x, ln1g_ref[0], ln1b_ref[0]).astype(jnp.bfloat16)
    # hd**-0.5 query scale is pre-folded into wq/bq at init.
    q = jnp.dot(h, wq_ref[0], preferred_element_type=jnp.float32) + bq_ref[0]
    k = jnp.dot(h, wk_ref[0], preferred_element_type=jnp.float32)   # k_proj: no bias
    v = jnp.dot(h, wv_ref[0], preferred_element_type=jnp.float32) + bv_ref[0]

    # single fused relayout to (H, T, hd) batched-head form
    split = lambda a: jnp.stack(
        [a[:, i * hd:(i + 1) * hd] for i in range(N_HEADS)], axis=0).astype(jnp.bfloat16)
    qh, kh, vh = split(q), split(k), split(v)          # (H, T, hd) bf16

    # batched-over-heads scores + f32 softmax (score tile is lane-dense: last dim = T)
    s = jnp.einsum('hqd,hkd->hqk', qh, kh,
                   preferred_element_type=jnp.float32)               # (H, T, T)
    s = s - jnp.max(s, axis=-1, keepdims=True)
    p = jnp.exp(s)
    # NOTE: approx reciprocal (EUP slot) — ~1e-3 rel. error, fine for bf16 inference.
    p = p * pl.reciprocal(jnp.sum(p, axis=-1, keepdims=True), approx=True)

    ctx = jnp.einsum('hqk,hkd->hqd', p.astype(jnp.bfloat16), vh,
                     preferred_element_type=jnp.float32)             # (H, T, hd)

    # per-head output projection against sublane-aligned wo row slices (no lane concat)
    wo = wo_ref[0]
    attn = bo_ref[0] + jnp.dot(ctx[0].astype(jnp.bfloat16), wo[:hd, :],
                               preferred_element_type=jnp.float32)
    for i in range(1, N_HEADS):
        attn = attn + jnp.dot(ctx[i].astype(jnp.bfloat16), wo[i * hd:(i + 1) * hd, :],
                              preferred_element_type=jnp.float32)
    x = x + attn

    # ---- MLP block (pre-LN) ----
    h2 = layer_norm(x, ln2g_ref[0], ln2b_ref[0]).astype(jnp.bfloat16)
    h2 = jnp.dot(h2, w1_ref[0], preferred_element_type=jnp.float32) + b1_ref[0]
    h2 = jax.nn.gelu(h2, approximate=True).astype(jnp.bfloat16)
    x = x + jnp.dot(h2, w2_ref[0], preferred_element_type=jnp.float32) + b2_ref[0]

    resid_ref[...] = x                                 # carry residual to next layer

    # ---- fused final encoder LayerNorm + writeback (last layer only) ----
    @pl.when(l == pl.num_programs(1) - 1)
    def _():
        o_ref[0] = layer_norm(x, lnfg_ref[...], lnfb_ref[...])

    # TODO(synk): at real whisper-large scale (T=1500, D=1280, D_FF=5120) this
    # layer-resident design must be tiled over T/KV (flash-style) and D_FF with an f32
    # accumulator, plus pl.Buffered(1) weight specs and explicit vmem_limit_bytes
    # (v7x has only 64 MiB VMEM).


# ======================= wrappers =======================

def conv_stack(feats, w1, b1, w2, b2, pos):
    """Fused conv1+GELU -> conv2(stride 2)+GELU + pos add.
    feats: (B, T, C) f32/bf16 mel features, T even.  Returns (B, T//2, D) bf16."""
    B, T, C = feats.shape
    _, _, D = w1.shape
    S = T // 2
    xp = jnp.pad(feats.astype(jnp.bfloat16), ((0, 0), (1, 1), (0, 0)))   # (B, T+2, C)
    # Free row-major reshape: pack time-row pairs along lanes so every in-kernel tap is a
    # contiguous, 128-lane-aligned slice (no strided gather, no im2col copy).
    xp = xp.reshape(B, S + 1, 2 * C)                                      # (B, S+1, 2C)
    return pl.pallas_call(
        _conv_stack_kernel,
        out_shape=jax.ShapeDtypeStruct((B, S, D), jnp.bfloat16),
        grid=(B,),
        in_specs=[
            pl.BlockSpec((1, S + 1, 2 * C), lambda i: (i, 0, 0)),
            pl.BlockSpec((3, C, D), lambda i: (0, 0, 0)),
            pl.BlockSpec((1, D), lambda i: (0, 0)),
            pl.BlockSpec((3, D, D), lambda i: (0, 0, 0)),
            pl.BlockSpec((1, D), lambda i: (0, 0)),
            pl.BlockSpec((S, D), lambda i: (0, 0)),
        ],
        out_specs=pl.BlockSpec((1, S, D), lambda i: (i, 0, 0)),
        compiler_params=pltpu.CompilerParams(dimension_semantics=("parallel",)),
    )(xp, w1, b1.reshape(1, D), w2, b2.reshape(1, D), pos)


def encoder_stack(x, lp, ln_f_g, ln_f_b):
    """All N_LAYERS Whisper encoder layers + final LayerNorm in ONE pallas_call.
    x: (B, T, D) bf16.  lp: dict of weights stacked along a leading L axis."""
    B, T, D = x.shape
    L = lp["wq"].shape[0]
    stacked = [
        lp["ln1_g"], lp["ln1_b"],
        lp["wq"], lp["bq"], lp["wk"], lp["wv"], lp["bv"], lp["wo"], lp["bo"],
        lp["ln2_g"], lp["ln2_b"],
        lp["w1"], lp["b1"], lp["w2"], lp["b2"],
    ]

    def layer_spec(a):
        zeros = (0,) * (a.ndim - 1)
        return pl.BlockSpec((1,) + a.shape[1:], lambda b, l: (l,) + zeros)

    def const_spec(a):
        zeros = (0,) * a.ndim
        return pl.BlockSpec(a.shape, lambda b, l: zeros)

    return pl.pallas_call(
        _encoder_stack_kernel,
        out_shape=jax.ShapeDtypeStruct((B, T, D), jnp.float32),
        grid=(B, L),
        in_specs=[pl.BlockSpec((1, T, D), lambda b, l: (b, 0, 0))]       # resident over L
                 + [layer_spec(a) for a in stacked]
                 + [const_spec(ln_f_g), const_spec(ln_f_b)],
        out_specs=pl.BlockSpec((1, T, D), lambda b, l: (b, 0, 0)),       # resident over L
        scratch_shapes=[pltpu.VMEM((T, D), jnp.float32)],                # residual stream
        compiler_params=pltpu.CompilerParams(
            dimension_semantics=("parallel", "arbitrary")),              # B split on v7x
    )(x, *stacked, ln_f_g, ln_f_b)


# ======================= processor + params (glue) =======================

def simple_log_mel(audio, sampling_rate):
    """(B, samples) audio -> (B, T_MELS, N_MELS) log-mel-like features, channels-last."""
    # TODO(synk): WhisperProcessor's STFT-based log-mel is approximated with
    # non-overlapping framing + a fixed positive filterbank; the Whisper dynamic-range
    # clamp and (x+4)/4 normalization are reproduced.
    del sampling_rate  # 16 kHz assumed
    B, _ = audio.shape
    frames = audio[:, :T_MELS * HOP].reshape(B, T_MELS, HOP)
    power = frames ** 2
    filt = jax.nn.softplus(jax.random.normal(jax.random.PRNGKey(42), (HOP, N_MELS))) * 0.1
    mel = jnp.maximum(power @ filt, 1e-10)
    log_spec = jnp.log10(mel)
    log_spec = jnp.maximum(log_spec, jnp.max(log_spec, axis=(1, 2), keepdims=True) - 8.0)
    return ((log_spec + 4.0) / 4.0).astype(jnp.float32)


def sinusoidal_pos_embed(length, channels, max_timescale=10000.0):
    inc = math.log(max_timescale) / (channels // 2 - 1)
    inv = jnp.exp(-inc * jnp.arange(channels // 2, dtype=jnp.float32))
    t = jnp.arange(length, dtype=jnp.float32)[:, None] * inv[None, :]
    return jnp.concatenate([jnp.sin(t), jnp.cos(t)], axis=1).astype(jnp.float32)


def init_params(key):
    scale = 0.02
    L, D, F = N_LAYERS, D_MODEL, D_FF

    def mm(k, shape, extra=1.0):   # matmul weights -> bf16 MXU operands
        return (scale * extra * jax.random.normal(k, shape)).astype(jnp.bfloat16)

    keys = jax.random.split(key, 8)
    return {
        "conv1_w": mm(keys[0], (3, N_MELS, D)),
        "conv1_b": jnp.zeros((D,), jnp.float32),
        "conv2_w": mm(keys[1], (3, D, D)),
        "conv2_b": jnp.zeros((D,), jnp.float32),
        "pos_embed": sinusoidal_pos_embed(T_SEQ, D),
        "ln_f_g": jnp.ones((1, D), jnp.float32),
        "ln_f_b": jnp.zeros((1, D), jnp.float32),
        # per-layer weights stacked along a leading L axis (single fused pallas_call)
        "layers": {
            "ln1_g": jnp.ones((L, 1, D), jnp.float32),
            "ln1_b": jnp.zeros((L, 1, D), jnp.float32),
            # hd**-0.5 query scale folded into wq (and bq) at init
            "wq": mm(keys[2], (L, D, D), extra=HEAD_DIM ** -0.5),
            "bq": jnp.zeros((L, 1, D), jnp.float32) * (HEAD_DIM ** -0.5),
            "wk": mm(keys[3], (L, D, D)),
            "wv": mm(keys[4], (L, D, D)),
            "bv": jnp.zeros((L, 1, D), jnp.float32),
            "wo": mm(keys[5], (L, D, D)),
            "bo": jnp.zeros((L, 1, D), jnp.float32),
            "ln2_g": jnp.ones((L, 1, D), jnp.float32),
            "ln2_b": jnp.zeros((L, 1, D), jnp.float32),
            "w1": mm(keys[6], (L, D, F)),
            "b1": jnp.zeros((L, 1, F), jnp.float32),
            "w2": mm(keys[7], (L, F, D)),
            "b2": jnp.zeros((L, 1, D), jnp.float32),
        },
    }


def whisper_encoder_forward(audio, sampling_rate, params):
    feats = simple_log_mel(audio, sampling_rate)                       # (B, T_MELS, N_MELS)
    x = conv_stack(feats, params["conv1_w"], params["conv1_b"],        # (B, T_SEQ, D) bf16
                   params["conv2_w"], params["conv2_b"], params["pos_embed"])
    return encoder_stack(x, params["layers"],                          # (B, T_SEQ, D) f32
                         params["ln_f_g"], params["ln_f_b"])


# ======================= main =======================

if __name__ == "__main__":
    key = jax.random.PRNGKey(0)
    k_audio, k_params = jax.random.split(key)

    B = 2
    audio = jax.random.normal(k_audio, (B, T_MELS * HOP), dtype=jnp.float32)  # (2, 16384)
    sampling_rate = 16000

    params = init_params(k_params)
    out = whisper_encoder_forward(audio, sampling_rate, params)
    out = jax.block_until_ready(out)

    assert out.shape == (B, T_SEQ, D_MODEL), out.shape
    assert bool(jnp.all(jnp.isfinite(out)))
    print("KERNEL_OK")
</pallas_src>

<mosaic_0001>
module attributes {stable_mosaic.version = 11 : i64} {
  func.func @_conv_stack_kernel(%arg0: i32, %arg1: memref<1x129x256xbf16, #tpu.memory_space<vmem>>, %arg2: memref<3x128x128xbf16, #tpu.memory_space<vmem>>, %arg3: memref<1x128xf32, #tpu.memory_space<vmem>>, %arg4: memref<3x128x128xbf16, #tpu.memory_space<vmem>>, %arg5: memref<1x128xf32, #tpu.memory_space<vmem>>, %arg6: memref<128x128xf32, #tpu.memory_space<vmem>>, %arg7: memref<1x128x128xbf16, #tpu.memory_space<vmem>>) attributes {dimension_semantics = [#tpu.dimension_semantics<parallel>], iteration_bounds = array<i64: 2>, scalar_prefetch = 0 : i64, scratch_operands = 0 : i64, tpu.core_type = #tpu.core_type<tc>, window_params = [{transform_indices = @transform_0, window_bounds = array<i64: 1, 129, 256>}, {pipeline_mode = #tpu.pipeline_mode<synchronous>, transform_indices = @transform_1, window_bounds = array<i64: 3, 128, 128>}, {pipeline_mode = #tpu.pipeline_mode<synchronous>, transform_indices = @transform_2, window_bounds = array<i64: 1, 128>}, {pipeline_mode = #tpu.pipeline_mode<synchronous>, transform_indices = @transform_3, window_bounds = array<i64: 3, 128, 128>}, {pipeline_mode = #tpu.pipeline_mode<synchronous>, transform_indices = @transform_4, window_bounds = array<i64: 1, 128>}, {pipeline_mode = #tpu.pipeline_mode<synchronous>, transform_indices = @transform_5, window_bounds = array<i64: 128, 128>}, {transform_indices = @transform_6, window_bounds = array<i64: 1, 128, 128>}]} {
    %c0 = arith.constant 0 : index
    %c0_0 = arith.constant 0 : index
    %c0_1 = arith.constant 0 : index
    %0 = vector.load %arg1[%c0, %c0_0, %c0_1] : memref<1x129x256xbf16, #tpu.memory_space<vmem>>, vector<1x129x256xbf16>
    %1 = vector.shape_cast %0 : vector<1x129x256xbf16> to vector<129x256xbf16>
    %2 = vector.extract_strided_slice %1 {offsets = [0, 0], sizes = [128, 128], strides = [1, 1]} : vector<129x256xbf16> to vector<128x128xbf16>
    %3 = vector.extract_strided_slice %1 {offsets = [0, 128], sizes = [128, 128], strides = [1, 1]} : vector<129x256xbf16> to vector<128x128xbf16>
    %4 = vector.extract_strided_slice %1 {offsets = [1, 0], sizes = [128, 128], strides = [1, 1]} : vector<129x256xbf16> to vector<128x128xbf16>
    %5 = vector.extract_strided_slice %1 {offsets = [1, 128], sizes = [128, 128], strides = [1, 1]} : vector<129x256xbf16> to vector<128x128xbf16>
    %c0_2 = arith.constant 0 : index
    %c0_3 = arith.constant 0 : index
    %c0_4 = arith.constant 0 : index
    %6 = vector.load %arg2[%c0_2, %c0_3, %c0_4] : memref<3x128x128xbf16, #tpu.memory_space<vmem>>, vector<1x128x128xbf16>
    %7 = vector.shape_cast %6 : vector<1x128x128xbf16> to vector<128x128xbf16>
    %cst = arith.constant dense<0.000000e+00> : vector<128x128xf32>
    %8 = tpu.matmul %2, %7, %cst {dimension_numbers = #tpu.dot_dimension_numbers<[1], [0], [0], [1], [0, 0, 1, 1], [], []>} : vector<128x128xbf16>, vector<128x128xbf16>, vector<128x128xf32> -> vector<128x128xf32>
    %c1 = arith.constant 1 : index
    %c0_5 = arith.constant 0 : index
    %c0_6 = arith.constant 0 : index
    %9 = vector.load %arg2[%c1, %c0_5, %c0_6] : memref<3x128x128xbf16, #tpu.memory_space<vmem>>, vector<1x128x128xbf16>
    %10 = vector.shape_cast %9 : vector<1x128x128xbf16> to vector<128x128xbf16>
    %cst_7 = arith.constant dense<0.000000e+00> : vector<128x128xf32>
    %11 = tpu.matmul %3, %10, %cst_7 {dimension_numbers = #tpu.dot_dimension_numbers<[1], [0], [0], [1], [0, 0, 1, 1], [], []>} : vector<128x128xbf16>, vector<128x128xbf16>, vector<128x128xf32> -> vector<128x128xf32>
    %12 = arith.addf %8, %11 : vector<128x128xf32>
    %c2 = arith.constant 2 : index
    %c0_8 = arith.constant 0 : index
    %c0_9 = arith.constant 0 : index
    %13 = vector.load %arg2[%c2, %c0_8, %c0_9] : memref<3x128x128xbf16, #tpu.memory_space<vmem>>, vector<1x128x128xbf16>
    %14 = vector.shape_cast %13 : vector<1x128x128xbf16> to vector<128x128xbf16>
    %cst_10 = arith.constant dense<0.000000e+00> : vector<128x128xf32>
    %15 = tpu.matmul %4, %14, %cst_10 {dimension_numbers = #tpu.dot_dimension_numbers<[1], [0], [0], [1], [0, 0, 1, 1], [], []>} : vector<128x128xbf16>, vector<128x128xbf16>, vector<128x128xf32> -> vector<128x128xf32>
    %16 = arith.addf %12, %15 : vector<128x128xf32>
    %c0_11 = arith.constant 0 : index
    %c0_12 = arith.constant 0 : index
    %17 = vector.load %arg3[%c0_11, %c0_12] : memref<1x128xf32, #tpu.memory_space<vmem>>, vector<1x128xf32>
    %18 = vector.broadcast %17 : vector<1x128xf32> to vector<128x128xf32>
    %19 = arith.addf %16, %18 : vector<128x128xf32>
    %20 = arith.mulf %19, %19 : vector<128x128xf32>
    %21 = arith.mulf %19, %20 : vector<128x128xf32>
    %cst_13 = arith.constant 4.471500e-02 : f32
    %22 = vector.broadcast %cst_13 : f32 to vector<128x128xf32>
    %23 = arith.mulf %22, %21 : vector<128x128xf32>
    %24 = arith.addf %19, %23 : vector<128x128xf32>
    %cst_14 = arith.constant 0.797884583 : f32
    %25 = vector.broadcast %cst_14 : f32 to vector<128x128xf32>
    %26 = arith.mulf %25, %24 : vector<128x128xf32>
    %27 = math.tanh %26 : vector<128x128xf32>
    %cst_15 = arith.constant 1.000000e+00 : f32
    %28 = vector.broadcast %cst_15 : f32 to vector<128x128xf32>
    %29 = arith.addf %28, %27 : vector<128x128xf32>
    %cst_16 = arith.constant 5.000000e-01 : f32
    %30 = vector.broadcast %cst_16 : f32 to vector<128x128xf32>
    %31 = arith.mulf %30, %29 : vector<128x128xf32>
    %32 = arith.mulf %19, %31 : vector<128x128xf32>
    %33 = arith.truncf %32 : vector<128x128xf32> to vector<128x128xbf16>
    %c0_17 = arith.constant 0 : index
    %c0_18 = arith.constant 0 : index
    %c0_19 = arith.constant 0 : index
    %34 = vector.load %arg2[%c0_17, %c0_18, %c0_19] : memref<3x128x128xbf16, #tpu.memory_space<vmem>>, vector<1x128x128xbf16>
    %35 = vector.shape_cast %34 : vector<1x128x128xbf16> to vector<128x128xbf16>
    %cst_20 = arith.constant dense<0.000000e+00> : vector<128x128xf32>
    %36 = tpu.matmul %3, %35, %cst_20 {dimension_numbers = #tpu.dot_dimension_numbers<[1], [0], [0], [1], [0, 0, 1, 1], [], []>} : vector<128x128xbf16>, vector<128x128xbf16>, vector<128x128xf32> -> vector<128x128xf32>
    %c1_21 = arith.constant 1 : index
    %c0_22 = arith.constant 0 : index
    %c0_23 = arith.constant 0 : index
    %37 = vector.load %arg2[%c1_21, %c0_22, %c0_23] : memref<3x128x128xbf16, #tpu.memory_space<vmem>>, vector<1x128x128xbf16>
    %38 = vector.shape_cast %37 : vector<1x128x128xbf16> to vector<128x128xbf16>
    %cst_24 = arith.constant dense<0.000000e+00> : vector<128x128xf32>
    %39 = tpu.matmul %4, %38, %cst_24 {dimension_numbers = #tpu.dot_dimension_numbers<[1], [0], [0], [1], [0, 0, 1, 1], [], []>} : vector<128x128xbf16>, vector<128x128xbf16>, vector<128x128xf32> -> vector<128x128xf32>
    %40 = arith.addf %36, %39 : vector<128x128xf32>
    %c2_25 = arith.constant 2 : index
    %c0_26 = arith.constant 0 : index
    %c0_27 = arith.constant 0 : index
    %41 = vector.load %arg2[%c2_25, %c0_26, %c0_27] : memref<3x128x128xbf16, #tpu.memory_space<vmem>>, vector<1x128x128xbf16>
    %42 = vector.shape_cast %41 : vector<1x128x128xbf16> to vector<128x128xbf16>
    %cst_28 = arith.constant dense<0.000000e+00> : vector<128x128xf32>
    %43 = tpu.matmul %5, %42, %cst_28 {dimension_numbers = #tpu.dot_dimension_numbers<[1], [0], [0], [1], [0, 0, 1, 1], [], []>} : vector<128x128xbf16>, vector<128x128xbf16>, vector<128x128xf32> -> vector<128x128xf32>
    %44 = arith.addf %40, %43 : vector<128x128xf32>
    %c0_29 = arith.constant 0 : index
    %c0_30 = arith.constant 0 : index
    %45 = vector.load %arg3[%c0_29, %c0_30] : memref<1x128xf32, #tpu.memory_space<vmem>>, vector<1x128xf32>
    %46 = vector.broadcast %45 : vector<1x128xf32> to vector<128x128xf32>
    %47 = arith.addf %44, %46 : vector<128x128xf32>
    %48 = arith.mulf %47, %47 : vector<128x128xf32>
    %49 = arith.mulf %47, %48 : vector<128x128xf32>
    %cst_31 = arith.constant 4.471500e-02 : f32
    %50 = vector.broadcast %cst_31 : f32 to vector<128x128xf32>
    %51 = arith.mulf %50, %49 : vector<128x128xf32>
    %52 = arith.addf %47, %51 : vector<128x128xf32>
    %cst_32 = arith.constant 0.797884583 : f32
    %53 = vector.broadcast %cst_32 : f32 to vector<128x128xf32>
    %54 = arith.mulf %53, %52 : vector<128x128xf32>
    %55 = math.tanh %54 : vector<128x128xf32>
    %cst_33 = arith.constant 1.000000e+00 : f32
    %56 = vector.broadcast %cst_33 : f32 to vector<128x128xf32>
    %57 = arith.addf %56, %55 : vector<128x128xf32>
    %cst_34 = arith.constant 5.000000e-01 : f32
    %58 = vector.broadcast %cst_34 : f32 to vector<128x128xf32>
    %59 = arith.mulf %58, %57 : vector<128x128xf32>
    %60 = arith.mulf %47, %59 : vector<128x128xf32>
    %61 = arith.truncf %60 : vector<128x128xf32> to vector<128x128xbf16>
    %cst_35 = arith.constant 0.000000e+00 : bf16
    %62 = vector.broadcast %cst_35 : bf16 to vector<1x128xbf16>
    %63 = vector.extract_strided_slice %61 {offsets = [0, 0], sizes = [127, 128], strides = [1, 1]} : vector<128x128xbf16> to vector<127x128xbf16>
    %64 = tpu.concatenate %62, %63 in 0 : vector<1x128xbf16>, vector<127x128xbf16> -> vector<128x128xbf16>
    %c0_36 = arith.constant 0 : index
    %c0_37 = arith.constant 0 : index
    %c0_38 = arith.constant 0 : index
    %65 = vector.load %arg4[%c0_36, %c0_37, %c0_38] : memref<3x128x128xbf16, #tpu.memory_space<vmem>>, vector<1x128x128xbf16>
    %66 = vector.shape_cast %65 : vector<1x128x128xbf16> to vector<128x128xbf16>
    %cst_39 = arith.constant dense<0.000000e+00> : vector<128x128xf32>
    %67 = tpu.matmul %64, %66, %cst_39 {dimension_numbers = #tpu.dot_dimension_numbers<[1], [0], [0], [1], [0, 0, 1, 1], [], []>} : vector<128x128xbf16>, vector<128x128xbf16>, vector<128x128xf32> -> vector<128x128xf32>
    %c1_40 = arith.constant 1 : index
    %c0_41 = arith.constant 0 : index
    %c0_42 = arith.constant 0 : index
    %68 = vector.load %arg4[%c1_40, %c0_41, %c0_42] : memref<3x128x128xbf16, #tpu.memory_space<vmem>>, vector<1x128x128xbf16>
    %69 = vector.shape_cast %68 : vector<1x128x128xbf16> to vector<128x128xbf16>
    %cst_43 = arith.constant dense<0.000000e+00> : vector<128x128xf32>
    %70 = tpu.matmul %33, %69, %cst_43 {dimension_numbers = #tpu.dot_dimension_numbers<[1], [0], [0], [1], [0, 0, 1, 1], [], []>} : vector<128x128xbf16>, vector<128x128xbf16>, vector<128x128xf32> -> vector<128x128xf32>
    %71 = arith.addf %67, %70 : vector<128x128xf32>
    %c2_44 = arith.constant 2 : index
    %c0_45 = arith.constant 0 : index
    %c0_46 = arith.constant 0 : index
    %72 = vector.load %arg4[%c2_44, %c0_45, %c0_46] : memref<3x128x128xbf16, #tpu.memory_space<vmem>>, vector<1x128x128xbf16>
    %73 = vector.shape_cast %72 : vector<1x128x128xbf16> to vector<128x128xbf16>
    %cst_47 = arith.constant dense<0.000000e+00> : vector<128x128xf32>
    %74 = tpu.matmul %61, %73, %cst_47 {dimension_numbers = #tpu.dot_dimension_numbers<[1], [0], [0], [1], [0, 0, 1, 1], [], []>} : vector<128x128xbf16>, vector<128x128xbf16>, vector<128x128xf32> -> vector<128x128xf32>
    %75 = arith.addf %71, %74 : vector<128x128xf32>
    %c0_48 = arith.constant 0 : index
    %c0_49 = arith.constant 0 : index
    %76 = vector.load %arg5[%c0_48, %c0_49] : memref<1x128xf32, #tpu.memory_space<vmem>>, vector<1x128xf32>
    %77 = vector.broadcast %76 : vector<1x128xf32> to vector<128x128xf32>
    %78 = arith.addf %75, %77 : vector<128x128xf32>
    %79 = arith.mulf %78, %78 : vector<128x128xf32>
    %80 = arith.mulf %78, %79 : vector<128x128xf32>
    %cst_50 = arith.constant 4.471500e-02 : f32
    %81 = vector.broadcast %cst_50 : f32 to vector<128x128xf32>
    %82 = arith.mulf %81, %80 : vector<128x128xf32>
    %83 = arith.addf %78, %82 : vector<128x128xf32>
    %cst_51 = arith.constant 0.797884583 : f32
    %84 = vector.broadcast %cst_51 : f32 to vector<128x128xf32>
    %85 = arith.mulf %84, %83 : vector<128x128xf32>
    %86 = math.tanh %85 : vector<128x128xf32>
    %cst_52 = arith.constant 1.000000e+00 : f32
    %87 = vector.broadcast %cst_52 : f32 to vector<128x128xf32>
    %88 = arith.addf %87, %86 : vector<128x128xf32>
    %cst_53 = arith.constant 5.000000e-01 : f32
    %89 = vector.broadcast %cst_53 : f32 to vector<128x128xf32>
    %90 = arith.mulf %89, %88 : vector<128x128xf32>
    %91 = arith.mulf %78, %90 : vector<128x128xf32>
    %c0_54 = arith.constant 0 : index
    %c0_55 = arith.constant 0 : index
    %92 = vector.load %arg6[%c0_54, %c0_55] : memref<128x128xf32, #tpu.memory_space<vmem>>, vector<128x128xf32>
    %93 = arith.addf %91, %92 : vector<128x128xf32>
    %94 = arith.truncf %93 : vector<128x128xf32> to vector<128x128xbf16>
    %c0_56 = arith.constant 0 : index
    %c0_57 = arith.constant 0 : index
    %c0_58 = arith.constant 0 : index
    %95 = vector.load %arg7[%c0_56, %c0_57, %c0_58] : memref<1x128x128xbf16, #tpu.memory_space<vmem>>, vector<1x128x128xbf16>
    %96 = vector.shape_cast %95 : vector<1x128x128xbf16> to vector<128x128xbf16>
    %97 = vector.shape_cast %94 : vector<128x128xbf16> to vector<1x128x128xbf16>
    tpu.vector_store %arg7[%c0_56, %c0_57, %c0_58], %97 {strides = array<i32>} : memref<1x128x128xbf16, #tpu.memory_space<vmem>>, vector<1x128x128xbf16>,
    return
  }
  func.func @transform_0(%arg0: i32) -> (i32, i32, i32) {
    %c0_i32 = arith.constant 0 : i32
    %c0_i32_0 = arith.constant 0 : i32
    %c0_i32_1 = arith.constant 0 : i32
    return %arg0, %c0_i32, %c0_i32_0 : i32, i32, i32
  }
  func.func @transform_1(%arg0: i32) -> (i32, i32, i32) {
    %c0_i32 = arith.constant 0 : i32
    %c0_i32_0 = arith.constant 0 : i32
    %c0_i32_1 = arith.constant 0 : i32
    %c0_i32_2 = arith.constant 0 : i32
    return %c0_i32, %c0_i32_0, %c0_i32_1 : i32, i32, i32
  }
  func.func @transform_2(%arg0: i32) -> (i32, i32) {
    %c0_i32 = arith.constant 0 : i32
    %c0_i32_0 = arith.constant 0 : i32
    %c0_i32_1 = arith.constant 0 : i32
    return %c0_i32, %c0_i32_0 : i32, i32
  }
  func.func @transform_3(%arg0: i32) -> (i32, i32, i32) {
    %c0_i32 = arith.constant 0 : i32
    %c0_i32_0 = arith.constant 0 : i32
    %c0_i32_1 = arith.constant 0 : i32
    %c0_i32_2 = arith.constant 0 : i32
    return %c0_i32, %c0_i32_0, %c0_i32_1 : i32, i32, i32
  }
  func.func @transform_4(%arg0: i32) -> (i32, i32) {
    %c0_i32 = arith.constant 0 : i32
    %c0_i32_0 = arith.constant 0 : i32
    %c0_i32_1 = arith.constant 0 : i32
    return %c0_i32, %c0_i32_0 : i32, i32
  }
  func.func @transform_5(%arg0: i32) -> (i32, i32) {
    %c0_i32 = arith.constant 0 : i32
    %c0_i32_0 = arith.constant 0 : i32
    %c0_i32_1 = arith.constant 0 : i32
    return %c0_i32, %c0_i32_0 : i32, i32
  }
  func.func @transform_6(%arg0: i32) -> (i32, i32, i32) {
    %c0_i32 = arith.constant 0 : i32
    %c0_i32_0 = arith.constant 0 : i32
    %c0_i32_1 = arith.constant 0 : i32
    return %arg0, %c0_i32, %c0_i32_0 : i32, i32, i32
  }
}

</mosaic_0001>

<bundles_post_ra>
// kernel: tpu_custom_call.1
= control target key start
LH: loop header
LB: loop body
LE: loop exit
PB: predicated region body
PF: predicated region fallthrough
CT: control target
= control target key end

     0   :  { %11 = vsyncpa [#allocation3], 0  ;;  %s4778_s0 = inlined_call_operand.vmem [shape: bf16[2,129,256], index: 0, kind: input, shape index: {}]   ;;  %s4779_s1 = inlined_call_operand.vmem [shape: bf16[3,128,128], index: 1, kind: input, shape index: {}]   ;;  %s4780_s2 = inlined_call_operand.vmem [shape: f32[1,128], index: 2, kind: input, shape index: {}]   ;;  %s4781_s3 = inlined_call_operand.vmem [shape: bf16[3,128,128], index: 3, kind: input, shape index: {}]   ;;  %s4782_s4 = inlined_call_operand.vmem [shape: f32[1,128], index: 4, kind: input, shape index: {}]   ;;  %s4783_s5 = inlined_call_operand.vmem [shape: f32[128,128], index: 5, kind: input, shape index: {}]   ;;  %s4784_s6 = inlined_call_operand.hbm [shape: bf16[2,128,128], index: 6, kind: output, shape index: {}]  }
   0x1   :  { %13 = vsyncpa [#allocation3 + $0x1], 0  ;;  %s3675_s21 = smov 0   ;;  %s3677_s22 = smov 0  }
   0x2   :  { %s3679_s23 = smov 0   ;;  %s3681_s24 = smov 0  }
   0x3 LB: > { %s3696_s25 = sadd.s32 4294967295, %s3635_s24   ;;  %s2588_s26 = sadd.s32 4294967294, %s3635_s24   ;;  %s3635_s24 = sphi %s3681_s24, %s4792_s24   ;;  %s3631_s23 = sphi %s3679_s23, %s4791_s23   ;;  %s3627_s22 = sphi %s3677_s22, %s4790_s22   ;;  %s3623_s21 = sphi %s3675_s21, %s4789_s21  }
   0x4   : > { %s3700_s27 = sadd.s32 1, %s3635_s24   ;;  %s157_s28 = sadd.s32 1, %s3631_s23 }
   0x5   : > { %s154_s29 = ssub.s32 %s3635_s24, %s3700_s27  ;;  %p167_p0 = scmp.ne.s32.totalorder %s3631_s23, %s3627_s22 }
   0x6   : > { %p155_p1 = scmp.eq.s32.totalorder %s154_s29, 0  ;;  %p168_p2 = scmp.eq.s32.totalorder %s3696_s25, 1 }
   0x7   : > { %p173_p3 = scmp.ne.s32.totalorder %s3627_s22, %s3623_s21  ;;  %p174_p4 = scmp.eq.s32.totalorder %s2588_s26, 1 }
   0x8   : > { %s3711_s30 = scalar_select %p155_p1, %s3631_s23, %s157_s28  }
   0x9   : > { %p3713_p5 = por %p168_p2, %p167_p0  ;;  %p3717_p6 = por %p174_p4, %p173_p3 }
   0xa   : > { %p2591_p7 = scmp.ge.s32.totalorder %s3635_s24, 1  ;;  %p215_p8 = scmp.lt.s32.totalorder %s3635_s24, 3 }
   0xc   : > { %p216_p9 = pnand %p2591_p7, %p215_p8 }
   0xd   : > { %v3726_v0 = vld [vmem:[%s4779_s1 + $0x40] sm:$0xff] (!%p216_p9)   ;;  %p245_p10 = scmp.lt.s32.totalorder (!%p216_p9), %s3696_s25, 1  ;;  %v3738_v2 = vld [vmem:[%s4779_s1 + $0x48] sm:$0xff] (!%p216_p9)   ;;  %v3752_v4 = vld [vmem:[%s4779_s1 + $0x50] sm:$0xff] (!%p216_p9)   ;;  %vm691_vm0 = vsmask.f32 (!%p216_p9), 7424 }
   0xe   : > { %219 = sbr.rel (%p216_p9) target bundleno = 719 (0x2cf), region = 44  ;;  %v3731_v1 = vld [vmem:[%s4779_s1] sm:$0xff] (!%p216_p9)   ;;  %2955 = vmatprep.subr.bf16.mxu1 (!%p216_p9), %v3726_v0  ;;  %v3745_v3 = vld [vmem:[%s4779_s1 + $0x8] sm:$0xff] (!%p216_p9)   ;;  %v3758_v5 = vld [vmem:[%s4779_s1 + $0x10] sm:$0xff] (!%p216_p9)   ;;  %vm1657_vm1 = vsmask.f32 (!%p216_p9), 256 }
   0xf   : > { %2987 = vmatprep.subr.bf16.mxu0 (!%p216_p9), %v3731_v1  ;;  %2956 = vmatpush3.bf16.msra.mxu1 (!%p216_p9), %v3726_v0  ;;  %v3767_v6 = vld [vmem:[%s4779_s1 + $0x58] sm:$0xff] (!%p216_p9)   ;;  %v3781_v8 = vld [vmem:[%s4779_s1 + $0x60] sm:$0xff] (!%p216_p9)   ;;  %v3797_v10 = vld [vmem:[%s4779_s1 + $0x68] sm:$0xff] (!%p216_p9)   ;;  %vm1729_vm2 = vcmask (!%p216_p9), 1040384   ;;  %s242_s9 = sand.u32 (!%p216_p9), 1, %s3627_s22   ;;  %s2763_s15 = sshll.u32 (!%p216_p9), %s3696_s25, 10 }
  0x10   : > { %2988 = vmatpush3.bf16.msra.mxu0 (!%p216_p9), %v3731_v1  ;;  %2957 = vmatprep.subr.bf16.mxu1 (!%p216_p9), %v3738_v2  ;;  %v3773_v7 = vld [vmem:[%s4779_s1 + $0x18] sm:$0xff] (!%p216_p9)   ;;  %v3787_v9 = vld [vmem:[%s4779_s1 + $0x20] sm:$0xff] (!%p216_p9)   ;;  %v3803_v11 = vld [vmem:[%s4779_s1 + $0x28] sm:$0xff] (!%p216_p9)   ;;  %s2592_s14 = sshll.u32 (!%p216_p9), %s242_s9, 6  ;;  %s4730_s20 = scalar_lea.hbm (!%p216_p9), %s4784_s6, %s2763_s15 }
  0x11   : > { %2989 = vmatprep.subr.bf16.mxu0 (!%p216_p9), %v3745_v3  ;;  %v3822_v14 = vld [vmem:[%s4779_s1 + $0x70] sm:$0xff] (!%p216_p9)   ;;  %v3834_v16 = vld [vmem:[%s4779_s1 + $0x78] sm:$0xff] (!%p216_p9)   ;;  %v3851_v18 = vld [vmem:[%s4779_s1 + $0x80] sm:$0xff] (!%p216_p9)   ;;  %s4664_s19 = scalar_lea.vmem (!%p216_p9), [#allocation2], %s2592_s14 }
  0x12   : > { %v3828_v15 = vld [vmem:[%s4779_s1 + $0x30] sm:$0xff] (!%p216_p9)   ;;  %v3842_v17 = vld [vmem:[%s4779_s1 + $0x38] sm:$0xff] (!%p216_p9)   ;;  %v3865_v21 = vld [vmem:[%s4779_s1 + $0x88] sm:$0xff] (!%p216_p9)   ;;  %s2526_s16 = sshll.u32 (!%p216_p9), %s4664_s19, 4  ;;  %s4732_s16 = int_to_ptr.vmem [resolvable:$true] %s2526_s16 }
  0x13   : > { %2958 = vmatpush3.bf16.msra.mxu1 (!%p216_p9), %v3738_v2  ;;  %v3891_v29 = vld [vmem:[%s4779_s1 + $0x90] sm:$0xff] (!%p216_p9)   ;;  %v3915_v41 = vld [vmem:[%s4779_s1 + $0x98] sm:$0xff] (!%p216_p9)   ;;  %v3945_v52 = vld [vmem:[%s4779_s1 + $0xa0] sm:$0xff] (!%p216_p9)   ;;  %s3573_s28 = scalar_lea.vmem (!%p216_p9), %s4732_s16, 1024 }
  0x14   : > { %2990 = vmatpush3.bf16.msra.mxu0 (!%p216_p9), %v3745_v3  ;;  %2959 = vmatprep.subr.bf16.mxu1 (!%p216_p9), %v3752_v4  ;;  %v3976_v63 = vld [vmem:[%s4779_s1 + $0xa8] sm:$0xff] (!%p216_p9)   ;;  %vm4478_vm3 = vmand (!%p216_p9), %vm1729_vm2, %vm1657_vm1  ;;  %p3574_p11 = scmp.ne.s32.totalorder (!%p216_p9), %s4732_s16, %s3573_s28 }
  0x15   : > { %s246_s26 = scalar_select %p245_p10, %s3696_s25, 1  ;;  %2991 = vmatprep.subr.bf16.mxu0 %v3758_v5 }
  0x16   : > { %p3575_p12 = pnand %p3574_p11, %p3713_p5  ;;  %s3637_s25 = smov [#allocation2]  }
  0x17   : > { %s3355_s11 = smul.u32 136, %s246_s26  ;;  %2960 = vmatpush3.bf16.msra.mxu1 %v3752_v4  ;;  %s4737_s26 = scalar_lea.sflag [#allocation3], %s242_s9 }
  0x18   : > { %2992 = vmatpush3.bf16.msra.mxu0 %v3758_v5  ;;  %2961 = vmatprep.subr.bf16.mxu1 %v3767_v6  ;;  %p3576_p13 = pneg %p3575_p12  ;;  %s3577_s29 = sshll.u32 %s3637_s25, 4  ;;  %s3578_s29 = int_to_ptr.vmem [resolvable:$false] %s3577_s29 }
  0x19   : > { %2993 = vmatprep.subr.bf16.mxu0 %v3773_v7  ;;  %s3792_s18 = scalar_lea.vmem %s4778_s0, %s3355_s11  ;;  %s3579_s10 = scalar_lea.vmem %s3578_s29, 2048 }
  0x1a   : > { %v3808_v12 = vld [vmem:[%s3792_s18 + $0x4] ss:$8 sps:$4 sm:$0xff]   ;;  %v3812_v13 = vld [vmem:[%s3792_s18] ss:$8 sps:$4 sm:$0xff]   ;;  %v3854_v19 = vld [vmem:[%s3792_s18 + $0x14] ss:$8 sps:$4 sm:$0xff]   ;;  %p3580_p0 = scmp.lt.s32.totalorder %s4732_s16, %s3578_s29  ;;  %p3581_p1 = scmp.lt.s32.totalorder %s3579_s10, %s3573_s28 }
  0x1b   : > { %2962 = vmatpush3.bf16.msra.mxu1 %v3767_v6  ;;  %2971 = vmatprep.mubr.bf16.mxu1 %v3808_v12  ;;  %v3858_v20 = vld [vmem:[%s3792_s18 + $0x10] ss:$8 sps:$4 sm:$0xff]   ;;  %v3869_v22 = vld [vmem:[%s3792_s18 + $0x24] ss:$8 sps:$4 sm:$0xff]   ;;  %v3873_v23 = vld [vmem:[%s3792_s18 + $0x20] ss:$8 sps:$4 sm:$0xff]  }
  0x1c   : > { %2994 = vmatpush3.bf16.msra.mxu0 %v3773_v7  ;;  %2963 = vmatprep.subr.bf16.mxu1 %v3781_v8  ;;  %v695_v24 = vshll.u32 %v3812_v13, 16  ;;  %v704_v25 = vshrl.u32 %v3858_v20, 16  ;;  %v3882_v26 = vld [vmem:[%s3792_s18 + $0x34] ss:$8 sps:$4 sm:$0xff]   ;;  %v700_v27 = vshll.u32 %v3858_v20, 16  ;;  %v1308_v28 = vshll.u32 %v3854_v19, 16  ;;  %p3582_p2 = por %p3581_p1, %p3580_p0 }
  0x1d   : > { %2995 = vmatprep.subr.bf16.mxu0 %v3787_v9  ;;  %3003 = vmatprep.mubr.bf16.mxu0 %v3812_v13  ;;  %v1312_v30 = vshrl.u32 %v3854_v19, 16  ;;  %v1316_v31 = vshll.u32 %v3869_v22, 16  ;;  %v1320_v32 = vshrl.u32 %v3869_v22, 16  ;;  %v3898_v33 = vld [vmem:[%s3792_s18 + $0x30] ss:$8 sps:$4 sm:$0xff]   ;;  %v693_v34 = vshrl.u32 %v3812_v13, 16 }
  0x1e   : > { %v3902_v35 = vrot.slane %v1308_v28, 1  ;;  %v1324_v37 = vshll.u32 %v3882_v26, 16  ;;  %v708_v38 = vshll.u32 %v3873_v23, 16  ;;  %v3909_v39 = vld [vmem:[%s3792_s18 + $0x44] ss:$8 sps:$4 sm:$0xff]   ;;  %v697_v40 = vrot.slane %v695_v24, 1  ;;  %p3583_p3 = pnand %p3582_p2, %p3576_p13 }
  0x1f   : > { %2964 = vmatpush3.bf16.msra.mxu1 %v3781_v8  ;;  %v1318_v36 = vrot.slane %v1316_v31, 1  ;;  %v3922_v45 = vld [vmem:[%s3792_s18 + $0x40] ss:$8 sps:$4 sm:$0xff]   ;;  %v702_v46 = vrot.slane %v700_v27, 1  ;;  %v712_v47 = vshrl.u32 %v3873_v23, 16  ;;  %v716_v53 = vshll.u32 %v3898_v33, 16 }
  0x20   : > { %2996 = vmatpush3.bf16.msra.mxu0 %v3787_v9  ;;  %2965 = vmatprep.subr.bf16.mxu1 %v3797_v10  ;;  %v1314_v42 = vor.u32 %v1312_v30, %v3902_v35  ;;  %v3918_v44 = vrot.slane %v1324_v37, 1  ;;  %v3928_v48 = vld [vmem:[%s3792_s18 + $0x74] ss:$8 sps:$4 sm:$0xff]   ;;  %v3949_v54 = vld [vmem:[%s3792_s18 + $0x80] sm:$0x11]  ;;  %v710_v27 = vrot.slane %v708_v38, 1 }
  0x21   : > { %2997 = vmatprep.subr.bf16.mxu0 %v3803_v11  ;;  %v1322_v43 = vor.u32 %v1320_v32, %v1318_v36  ;;  %v3940_v51 = vld [vmem:[%s3792_s18 + $0x54] ss:$8 sps:$4 sm:$0xff]   ;;  %v1356_v55 = vshll.u32 %v3928_v48, 16  ;;  %v2668_v56 = vcombine.high %v3949_v54, %v3949_v54  ;;  %v1360_v57 = vshrl.u32 %v3928_v48, 16  ;;  %v3959_v58 = vld [vmem:[%s3792_s18 + $0x50] ss:$8 sps:$4 sm:$0xff]  }
  0x22   : > { %v3931_v49 = vsel %vm691_vm0, %v1314_v42, %v1318_v36  ;;  %v3963_v59 = vld [vmem:[%s3792_s18 + $0x64] ss:$8 sps:$4 sm:$0xff]   ;;  %v3970_v62 = vld [vmem:[%s3792_s18 + $0x60] ss:$8 sps:$4 sm:$0xff]   ;;  %v3995_v13 = vld [vmem:[%s3792_s18 + $0x70] ss:$8 sps:$4 sm:$0xff]   ;;  %v714_v28 = vor.u32 %v712_v47, %v710_v27  ;;  %v2658_v47 = vcombine.low %v3949_v54, %v3949_v54 }
  0x23   : > { %2966 = vmatpush3.bf16.msra.mxu1 %v3797_v10  ;;  %v3935_v50 = vsel %vm691_vm0, %v1322_v43, %v3918_v44  ;;  %v3965_v60 = vrot.slane %v1356_v55, 1  ;;  %v1364_v61 = vshll.u32 %v2668_v56, 16  ;;  %v718_v30 = vrot.slane %v716_v53, 1 }
  0x24   : > { %2998 = vmatpush3.bf16.msra.mxu0 %v3803_v11  ;;  %2967 = vmatprep.subr.bf16.mxu1 %v3822_v14  ;;  %v720_v32 = vshrl.u32 %v3898_v33, 16  ;;  %v740_v42 = vshll.u32 %v3970_v62, 16  ;;  %v744_v43 = vshrl.u32 %v3970_v62, 16 }
  0x25   : > { %2999 = vmatprep.subr.bf16.mxu0 %v3828_v15 }
  0x27   : > { %2968 = vmatpush3.bf16.msra.mxu1 %v3822_v14 }
  0x28   : > { %3000 = vmatpush3.bf16.msra.mxu0 %v3828_v15  ;;  %2969 = vmatprep.subr.bf16.mxu1 %v3834_v16 }
  0x29   : > { %3001 = vmatprep.subr.bf16.mxu0 %v3842_v17 }
  0x2b   : > { %2970 = vmatpush3.bf16.msra.mxu1 %v3834_v16 }
  0x2c   : > { %3002 = vmatpush3.bf16.msra.mxu0 %v3842_v17  ;;  %3051 = vmatprep.subr.bf16.mxu1 %v3726_v0 }
  0x2d   : > { %3019 = vmatprep.subr.bf16.mxu0 %v3851_v18 }
  0x2e   : > { %2972 = vmatmul.mubr.bf16.vlgmr.msra.gmra.mrb[0].mxu1 %v3854_v19 }
  0x2f   : > { %3004 = vmatmul.mubr.bf16.vlgmr.msra.gmra.mrb[0].mxu0 %v3858_v20  ;;  %3052 = vmatpush3.bf16.msra.mxu1 %v3726_v0  ;;  %v1362_v0 = vor.u32 %v1360_v57, %v3965_v60  ;;  %v719_v20 = vsel %vm691_vm0, %v714_v28, %v718_v30  ;;  %v752_v57 = vshrl.u32 %v3995_v13, 16 }
  0x30   : > { %3020 = vmatpush3.bf16.msra.mxu0 %v3851_v18  ;;  %3053 = vmatprep.subr.bf16.mxu1 %v3738_v2 }
  0x31   : > { %3021 = vmatprep.subr.bf16.mxu0 %v3865_v21  ;;  %2975 = vmatprep.mubr.bf16.mxu1 %v3869_v22 }
  0x32   : > { %3007 = vmatprep.mubr.bf16.mxu0 %v3873_v23  ;;  %v4002_v23 = vld [vmem:[%s4779_s1 + $0xb8] sm:$0xff]  }
  0x33   : > { %3054 = vmatpush3.bf16.msra.mxu1 %v3738_v2  ;;  %v1366_v2 = vrot.slane %v1364_v61, 1 }
  0x34   : > { %3022 = vmatpush3.bf16.msra.mxu0 %v3865_v21  ;;  %3055 = vmatprep.subr.bf16.mxu1 %v3752_v4 }
  0x35   : > { %3023 = vmatprep.subr.bf16.mxu0 %v3891_v29 }
  0x36   : > { %2976 = vmatmul.mubr.bf16.gmra.mrb[4].mxu1 %v3882_v26 }
  0x37   : > { %3008 = vmatmul.mubr.bf16.gmra.mrb[4].mxu0 %v3898_v33  ;;  %3056 = vmatpush3.bf16.msra.mxu1 %v3752_v4  ;;  %v3985_v4 = vld [vmem:[%s4779_s1 + $0xb0] sm:$0xff]  }
  0x38   : > { %3024 = vmatpush3.bf16.msra.mxu0 %v3891_v29  ;;  %3057 = vmatprep.subr.bf16.mxu1 %v3767_v6 }
  0x39   : > { %3025 = vmatprep.subr.bf16.mxu0 %v3915_v41  ;;  %2979 = vmatprep.mubr.bf16.mxu1 %v3909_v39 }
  0x3a   : > { %3011 = vmatprep.mubr.bf16.mxu0 %v3922_v45 }
  0x3b   : > { %3058 = vmatpush3.bf16.msra.mxu1 %v3767_v6  ;;  %v3988_v6 = vsel %vm691_vm0, %v1362_v0, %v1366_v2 }
  0x3c   : > { %3026 = vmatpush3.bf16.msra.mxu0 %v3915_v41  ;;  %3059 = vmatprep.subr.bf16.mxu1 %v3781_v8 }
  0x3d   : > { %3027 = vmatprep.subr.bf16.mxu0 %v3945_v52 }
  0x3e   : > { %2980 = vmatmul.mubr.bf16.gmra.mrb[8].mxu1 %v3940_v51 }
  0x3f   : > { %3012 = vmatmul.mubr.bf16.gmra.mrb[8].mxu0 %v3959_v58  ;;  %3060 = vmatpush3.bf16.msra.mxu1 %v3781_v8  ;;  %v698_v8 = vor.u32 %v697_v40, %v693_v34  ;;  %v732_v34 = vshll.u32 %v3959_v58, 16  ;;  %v736_v40 = vshrl.u32 %v3959_v58, 16  ;;  %v756_v58 = vshll.u32 %v2658_v47, 16 }
  0x40   : > { %3028 = vmatpush3.bf16.msra.mxu0 %v3945_v52  ;;  %3061 = vmatprep.subr.bf16.mxu1 %v3797_v10 }
  0x41   : > { %3029 = vmatprep.subr.bf16.mxu0 %v3976_v63  ;;  %2983 = vmatprep.mubr.bf16.mxu1 %v3963_v59  ;;  %v703_v24 = vsel %vm691_vm0, %v698_v8, %v702_v46  ;;  %v734_v37 = vrot.slane %v732_v34, 1  ;;  %v758_v61 = vrot.slane %v756_v58, 1  ;;  %v3453_v8 = vld [vmem:[%s4781_s3 + $0x70] sm:$0xff]  }
  0x42   : > { %3015 = vmatprep.mubr.bf16.mxu0 %v3970_v62 }
  0x43   : > { %3062 = vmatpush3.bf16.msra.mxu1 %v3797_v10  ;;  %v706_v10 = vor.u32 %v704_v25, %v702_v46  ;;  %v728_v25 = vshrl.u32 %v3922_v45, 16  ;;  %v738_v46 = vor.u32 %v736_v40, %v734_v37 }
  0x44   : > { %3030 = vmatpush3.bf16.msra.mxu0 %v3976_v63  ;;  %3063 = vmatprep.subr.bf16.mxu1 %v3822_v14 }
  0x45   : > { %3031 = vmatprep.subr.bf16.mxu0 %v3985_v4  ;;  %v711_v31 = vsel %vm691_vm0, %v706_v10, %v710_v27  ;;  %v4129_v27 = vld [vmem:[%s4781_s3 + $0x80] sm:$0xff]  }
  0x46   : > { %2984 = vmatmul.mubr.bf16.gmra.mrb[12].mxu1 %v3928_v48 }
  0x47   : > { %3016 = vmatmul.mubr.bf16.gmra.mrb[12].mxu0 %v3995_v13  ;;  %3064 = vmatpush3.bf16.msra.mxu1 %v3822_v14  ;;  %v724_v14 = vshll.u32 %v3922_v45, 16  ;;  %v748_v45 = vshll.u32 %v3995_v13, 16  ;;  %v3452_v13 = vld [vmem:[%s4781_s3 + $0x68] sm:$0xff]  }
  0x48   : > { %3032 = vmatpush3.bf16.msra.mxu0 %v3985_v4  ;;  %3065 = vmatprep.subr.bf16.mxu1 %v3834_v16 }
  0x49   : > { %3033 = vmatprep.subr.bf16.mxu0 %v4002_v23  ;;  %3035 = vmatprep.mubr.bf16.mxu0 %v703_v24  ;;  %v726_v36 = vrot.slane %v724_v14, 1  ;;  %v750_v55 = vrot.slane %v748_v45, 1  ;;  %v4143_v14 = vld [vmem:[%s4781_s3 + $0x90] sm:$0xff]   ;;  %v3470_v45 = vld [vmem:[%s4781_s3 + $0xb8] sm:$0xff]  }
  0x4a   : > { %3067 = vmatprep.mubr.bf16.mxu1 %v703_v24  ;;  %v4123_v24 = vld [vmem:[%s4781_s3] sm:$0xff]  }
  0x4b   : > { %3066 = vmatpush3.bf16.msra.mxu1 %v3834_v16  ;;  %v722_v16 = vor.u32 %v720_v32, %v718_v30  ;;  %v730_v33 = vor.u32 %v728_v25, %v726_v36  ;;  %v754_v54 = vor.u32 %v752_v57, %v750_v55 }
  0x4c   : > { %3034 = vmatpush3.bf16.msra.mxu0 %v4002_v23  ;;  %3083 = vmatprep.subr.bf16.mxu1 %v3731_v1 }
  0x4d   : > { %v727_v38 = vsel %vm691_vm0, %v722_v16, %v726_v36  ;;  %v4150_v16 = vld [vmem:[%s4781_s3 + $0x98] sm:$0xff]  }
  0x4e   : > { %3068 = vmatmul.mubr.bf16.vlgmr.msra.gmra.mrb[16].mxu1 %v711_v31 }
  0x4f   : > { %3036 = vmatmul.mubr.bf16.vlgmr.msra.gmra.mrb[0].mxu0 %v711_v31  ;;  %3084 = vmatpush3.bf16.msra.mxu1 %v3731_v1  ;;  %v735_v1 = vsel %vm691_vm0, %v730_v33, %v734_v37  ;;  %v4136_v31 = vld [vmem:[%s4781_s3 + $0x88] sm:$0xff]   ;;  %v3466_v33 = vld [vmem:[%s4781_s3 + $0xa0] sm:$0xff]  }
  0x50   : > { %3085 = vmatprep.subr.bf16.mxu1 %v3745_v3  ;;  %3039 = vmatprep.mubr.bf16.mxu0 %v719_v20 }
  0x51   : > { %3071 = vmatprep.mubr.bf16.mxu1 %v719_v20 }
  0x53   : > { %3086 = vmatpush3.bf16.msra.mxu1 %v3745_v3  ;;  %v742_v3 = vrot.slane %v740_v42, 1 }
  0x54   : > { %3087 = vmatprep.subr.bf16.mxu1 %v3758_v5 }
  0x55   : > { %v746_v53 = vor.u32 %v744_v43, %v742_v3  ;;  %v743_v56 = vsel %vm691_vm0, %v738_v46, %v742_v3  ;;  %v3469_v43 = vld [vmem:[%s4781_s3 + $0xb0] sm:$0xff]  }
  0x56   : > { %3072 = vmatmul.mubr.bf16.gmra.mrb[20].mxu1 %v727_v38 }
  0x57   : > { %3040 = vmatmul.mubr.bf16.gmra.mrb[4].mxu0 %v727_v38  ;;  %3088 = vmatpush3.bf16.msra.mxu1 %v3758_v5  ;;  %v751_v5 = vsel %vm691_vm0, %v746_v53, %v750_v55  ;;  %v3468_v38 = vld [vmem:[%s4781_s3 + $0xa8] sm:$0xff]  }
  0x58   : > { %3089 = vmatprep.subr.bf16.mxu1 %v3773_v7  ;;  %3043 = vmatprep.mubr.bf16.mxu0 %v735_v1 }
  0x59   : > { %3075 = vmatprep.mubr.bf16.mxu1 %v735_v1 }
  0x5b   : > { %3090 = vmatpush3.bf16.msra.mxu1 %v3773_v7  ;;  %v759_v7 = vsel %vm691_vm0, %v754_v54, %v758_v61 }
  0x5c   : > { %3091 = vmatprep.subr.bf16.mxu1 %v3787_v9 }
  0x5e   : > { %3076 = vmatmul.mubr.bf16.gmra.mrb[24].mxu1 %v743_v56 }
  0x5f   : > { %3044 = vmatmul.mubr.bf16.gmra.mrb[8].mxu0 %v743_v56  ;;  %3092 = vmatpush3.bf16.msra.mxu1 %v3787_v9  ;;  %v1303_v9 = vshll.u32 %v3808_v12, 16  ;;  %v4185_v56 = vld [vmem:[%s4780_s2] ss:$0 sm:$0xff] }
  0x60   : > { %3093 = vmatprep.subr.bf16.mxu1 %v3803_v11  ;;  %3047 = vmatprep.mubr.bf16.mxu0 %v751_v5 }
  0x61   : > { %3079 = vmatprep.mubr.bf16.mxu1 %v751_v5 }
  0x63   : > { %3094 = vmatpush3.bf16.msra.mxu1 %v3803_v11  ;;  %v1301_v11 = vshrl.u32 %v3808_v12, 16 }
  0x64   : > { %3095 = vmatprep.subr.bf16.mxu1 %v3828_v15 }
  0x66   : > { %3080 = vmatmul.mubr.bf16.gmra.mrb[28].mxu1 %v759_v7 }
  0x67   : > { %3048 = vmatmul.mubr.bf16.gmra.mrb[12].mxu0 %v759_v7  ;;  %3096 = vmatpush3.bf16.msra.mxu1 %v3828_v15  ;;  %v1305_v15 = vrot.slane %v1303_v9, 1 }
  0x68   : > { %3097 = vmatprep.subr.bf16.mxu1 %v3842_v17  ;;  %3099 = vmatprep.mubr.bf16.mxu1 %v3808_v12  ;;  %v1332_v12 = vshll.u32 %v3909_v39, 16 }
  0x6b   : > { %3098 = vmatpush3.bf16.msra.mxu1 %v3842_v17  ;;  %v1306_v17 = vor.u32 %v1305_v15, %v1301_v11 }
  0x6c   : > { %3115 = vmatprep.subr.bf16.mxu1 %v3851_v18 }
  0x6e   : > { %3100 = vmatmul.mubr.bf16.vlgmr.msra.gmra.mrb[16].mxu1 %v3854_v19  ;;  %v1328_v19 = vshrl.u32 %v3882_v26, 16 }
  0x6f   : > { %3116 = vmatpush3.bf16.msra.mxu1 %v3851_v18  ;;  %3103 = vmatprep.mubr.bf16.mxu1 %v3869_v22  ;;  %v1311_v18 = vsel %vm691_vm0, %v1306_v17, %v3902_v35  ;;  %v1340_v22 = vshll.u32 %v3940_v51, 16 }
  0x70   : > { %3117 = vmatprep.subr.bf16.mxu1 %v3865_v21  ;;  %v1330_v35 = vor.u32 %v1328_v19, %v3918_v44 }
  0x73   : > { %3118 = vmatpush3.bf16.msra.mxu1 %v3865_v21  ;;  %v1336_v21 = vshrl.u32 %v3909_v39, 16 }
  0x74   : > { %3119 = vmatprep.subr.bf16.mxu1 %v3891_v29 }
  0x76   : > { %3104 = vmatmul.mubr.bf16.gmra.mrb[20].mxu1 %v3882_v26 }
  0x77   : > { %3120 = vmatpush3.bf16.msra.mxu1 %v3891_v29  ;;  %3107 = vmatprep.mubr.bf16.mxu1 %v3909_v39  ;;  %v1334_v29 = vrot.slane %v1332_v12, 1  ;;  %v1352_v39 = vshrl.u32 %v3963_v59, 16 }
  0x78   : > { %3121 = vmatprep.subr.bf16.mxu1 %v3915_v41 }
  0x79   : > { %v1335_v62 = vsel %vm691_vm0, %v1330_v35, %v1334_v29 }
  0x7b   : > { %3122 = vmatpush3.bf16.msra.mxu1 %v3915_v41  ;;  %v1338_v41 = vor.u32 %v1336_v21, %v1334_v29 }
  0x7c   : > { %3123 = vmatprep.subr.bf16.mxu1 %v3945_v52 }
  0x7e   : > { %3108 = vmatmul.mubr.bf16.gmra.mrb[24].mxu1 %v3940_v51 }
  0x7f   : > { %3124 = vmatpush3.bf16.msra.mxu1 %v3945_v52  ;;  %3111 = vmatprep.mubr.bf16.mxu1 %v3963_v59  ;;  %v1348_v52 = vshll.u32 %v3963_v59, 16  ;;  %v3448_v59 = vld [vmem:[%s4781_s3 + $0x48] sm:$0xff]  }
  0x80   : > { %3125 = vmatprep.subr.bf16.mxu1 %v3976_v63 }
  0x81   : > { %v1350_v0 = vrot.slane %v1348_v52, 1 }
  0x83   : > { %3126 = vmatpush3.bf16.msra.mxu1 %v3976_v63  ;;  %v1344_v63 = vshrl.u32 %v3940_v51, 16  ;;  %v1354_v2 = vor.u32 %v1352_v39, %v1350_v0  ;;  %v3447_v51 = vld [vmem:[%s4781_s3 + $0x40] sm:$0xff]  }
  0x84   : > { %3127 = vmatprep.subr.bf16.mxu1 %v3985_v4  ;;  %3147 = vmatprep.subr.bf16.mxu0 %v3447_v51 }
  0x85   : > { %v1359_v44 = vsel %vm691_vm0, %v1354_v2, %v3965_v60  ;;  %3148 = vmatpush3.bf16.msra.mxu0 %v3447_v51  ;;  %v3449_v60 = vld [vmem:[%s4781_s3 + $0x50] sm:$0xff]  }
  0x86   : > { %3112 = vmatmul.mubr.bf16.gmra.mrb[28].mxu1 %v3928_v48  ;;  %v1342_v48 = vrot.slane %v1340_v22, 1  ;;  %3149 = vmatprep.subr.bf16.mxu0 %v3448_v59 }
  0x87   : > { %3128 = vmatpush3.bf16.msra.mxu1 %v3985_v4  ;;  %3131 = vmatprep.mubr.bf16.mxu1 %v1311_v18  ;;  %v3450_v4 = vld [vmem:[%s4781_s3 + $0x58] sm:$0xff]  }
  0x88   : > { %3129 = vmatprep.subr.bf16.mxu1 %v4002_v23  ;;  %v1343_v26 = vsel %vm691_vm0, %v1338_v41, %v1342_v48 }
  0x89   : > { %3150 = vmatpush3.bf16.msra.mxu0 %v3448_v59 }
  0x8a   : > { %3151 = vmatprep.subr.bf16.mxu0 %v3449_v60 }
  0x8b   : > { %3130 = vmatpush3.bf16.msra.mxu1 %v4002_v23  ;;  %v3454_v23 = vld [vmem:[%s4781_s3 + $0x78] sm:$0xff]  }
  0x8c   : > { %3243 = vmatprep.subr.bf16.mxu1 %v4129_v27 }
  0x8d   : > { %3152 = vmatpush3.bf16.msra.mxu0 %v3449_v60 }
  0x8e   : > { %3132 = vmatmul.mubr.bf16.vlgmr.msra.gmra.mrb[16].mxu1 %v3931_v49  ;;  %v1346_v49 = vor.u32 %v1344_v63, %v1342_v48  ;;  %3153 = vmatprep.subr.bf16.mxu0 %v3450_v4 }
  0x8f   : > { %3135 = vmatprep.mubr.bf16.mxu1 %v3935_v50  ;;  %3251 = vmatpush3.bf16.msra.mxu1 %v4129_v27 }
  0x90   : > { %v1351_v50 = vsel %vm691_vm0, %v1346_v49, %v1350_v0  ;;  %3244 = vmatprep.subr.bf16.mxu1 %v4136_v31 }
  0x91   : > { %3154 = vmatpush3.bf16.msra.mxu0 %v3450_v4 }
  0x93   : > { %3252 = vmatpush3.bf16.msra.mxu1 %v4136_v31 }
  0x94   : > { %3245 = vmatprep.subr.bf16.mxu1 %v4143_v14 }
  0x96   : > { %3136 = vmatmul.mubr.bf16.gmra.mrb[20].mxu1 %v1335_v62 }
  0x97   : > { %3139 = vmatprep.mubr.bf16.mxu1 %v1343_v26  ;;  %3253 = vmatpush3.bf16.msra.mxu1 %v4143_v14 }
  0x98   : > { %3246 = vmatprep.subr.bf16.mxu1 %v4150_v16 }
  0x9b   : > { %3254 = vmatpush3.bf16.msra.mxu1 %v4150_v16 }
  0x9c   : > { %3247 = vmatprep.subr.bf16.mxu1 %v3466_v33 }
  0x9e   : > { %3140 = vmatmul.mubr.bf16.gmra.mrb[24].mxu1 %v1351_v50 }
  0x9f   : > { %3143 = vmatprep.mubr.bf16.mxu1 %v1359_v44  ;;  %3255 = vmatpush3.bf16.msra.mxu1 %v3466_v33 }
  0xa0   : > { %3248 = vmatprep.subr.bf16.mxu1 %v3468_v38 }
  0xa3   : > { %3256 = vmatpush3.bf16.msra.mxu1 %v3468_v38 }
  0xa4   : > { %3249 = vmatprep.subr.bf16.mxu1 %v3469_v43 }
  0xa6   : > { %3144 = vmatmul.mubr.bf16.gmra.mrb[28].mxu1 %v3988_v6  ;;  %v3451_v6 = vld [vmem:[%s4781_s3 + $0x60] sm:$0xff]  }
  0xa7   : > { %3155 = vmatprep.subr.bf16.mxu0 %v3451_v6  ;;  %3257 = vmatpush3.bf16.msra.mxu1 %v3469_v43 }
  0xa8   : > { %3156 = vmatpush3.bf16.msra.mxu0 %v3451_v6  ;;  %3250 = vmatprep.subr.bf16.mxu1 %v3470_v45 }
  0xa9   : > { %3157 = vmatprep.subr.bf16.mxu0 %v3452_v13 }
  0xab   : > { %3258 = vmatpush3.bf16.msra.mxu1 %v3470_v45 }
  0xac   : > { %3158 = vmatpush3.bf16.msra.mxu0 %v3452_v13 }
  0xad   : > { %3159 = vmatprep.subr.bf16.mxu0 %v3453_v8 }
  0xb0   : > { %3160 = vmatpush3.bf16.msra.mxu0 %v3453_v8 }
  0xb1   : > { %3161 = vmatprep.subr.bf16.mxu0 %v3454_v23 }
  0xb4   : > { %3162 = vmatpush3.bf16.msra.mxu0 %v3454_v23 }
  0xb5   : > { %3179 = vmatprep.subr.bf16.mxu0 %v4123_v24 }
 0x101   : > { %v2973_v10 = vpop.f32.mrb[0].mxu1 }
 0x102   : > { %v431_v28 = vpop.f32.mrb[1].mxu1 }
 0x103   : > { %v2974_v30 = vpop.f32.mrb[2].mxu1 }
 0x104   : > { %v434_v32 = vpop.f32.mrb[3].mxu1 }
 0x109   : > { %v2977_v20 = vpop.f32.mrb[4].mxu1 }
 0x10a   : > { %v447_v25 = vpop.f32.mrb[5].mxu1 }
 0x10b   : > { %v2978_v34 = vpop.f32.mrb[6].mxu1 }
 0x10c   : > { %v450_v36 = vpop.f32.mrb[7].mxu1 }
 0x111   : > { %v4157_v37 = vpop.f32.mrb[8].mxu1 }
 0x112   : > { %v4162_v40 = vpop.f32.mrb[9].mxu1 }
 0x113   : > { %v4164_v42 = vpop.f32.mrb[10].mxu1 }
 0x114   : > { %v4166_v1 = vpop.f32.mrb[11].mxu1 }
 0x119   : > { %v4174_v46 = vpop.f32.mrb[12].mxu1 }
 0x11a   : > { %v4176_v3 = vpop.f32.mrb[13].mxu1 }
 0x11b   : > { %v4178_v47 = vpop.f32.mrb[14].mxu1 }
 0x11c   : > { %v4180_v53 = vpop.f32.mrb[15].mxu1 }
 0x122   : > { %v3037_v55 = vpop.f32.mrb[0].mxu0 }
 0x123   : > { %v3259_v57 = vadd.f32 %v3037_v55, %v2973_v10  ;;  %v850_v58 = vpop.f32.mrb[1].mxu0 }
 0x124   : > { %v3260_v5 = vadd.f32 %v850_v58, %v431_v28  ;;  %v3038_v54 = vpop.f32.mrb[2].mxu0 }
 0x125   : > { %v4188_v61 = vadd.f32 %v3259_v57, %v4185_v56  ;;  %v3261_v7 = vadd.f32 %v3038_v54, %v2974_v30  ;;  %v853_v9 = vpop.f32.mrb[3].mxu0 }
 0x126   : > { %v4191_v11 = vadd.f32 %v3260_v5, %v4185_v56  ;;  %v3262_v15 = vadd.f32 %v853_v9, %v434_v32 }
 0x127   : > { %v954_v17 = vmul.f32 %v4188_v61, %v4188_v61  ;;  %v4196_v18 = vadd.f32 %v3261_v7, %v4185_v56 }
 0x128   : > { %v952_v12 = vmul.f32 %v4191_v11, %v4191_v11  ;;  %v4201_v19 = vadd.f32 %v3262_v15, %v4185_v56 }
 0x129   : > { %v970_v21 = vmul.f32 %v954_v17, %v4188_v61  ;;  %v955_v22 = vmul.f32 %v4196_v18, %v4196_v18 }
 0x12a   : > { %v968_v29 = vmul.f32 %v952_v12, %v4191_v11  ;;  %v953_v35 = vmul.f32 %v4201_v19, %v4201_v19  ;;  %v3041_v41 = vpop.f32.mrb[4].mxu0 }
 0x12b   : > { %v986_v48 = vmul.f32 0.044715, %v970_v21  ;;  %v971_v52 = vmul.f32 %v955_v22, %v4196_v18  ;;  %v3263_v62 = vadd.f32 %v3041_v41, %v2977_v20  ;;  %v866_v63 = vpop.f32.mrb[5].mxu0 }
 0x12c   : > { %v984_v26 = vmul.f32 0.044715, %v968_v29  ;;  %v969_v39 = vmul.f32 %v953_v35, %v4201_v19  ;;  %v3264_v0 = vadd.f32 %v866_v63, %v447_v25  ;;  %v3042_v49 = vpop.f32.mrb[6].mxu0 }
 0x12d   : > { %v1002_v2 = vadd.f32 %v986_v48, %v4188_v61  ;;  %v987_v50 = vmul.f32 0.044715, %v971_v52  ;;  %v4213_v44 = vadd.f32 %v3263_v62, %v4185_v56  ;;  %v3265_v51 = vadd.f32 %v3042_v49, %v2978_v34  ;;  %v869_v59 = vpop.f32.mrb[7].mxu0 }
 0x12e   : > { %v1000_v60 = vadd.f32 %v984_v26, %v4191_v11  ;;  %v985_v4 = vmul.f32 0.044715, %v969_v39  ;;  %v4217_v6 = vadd.f32 %v3264_v0, %v4185_v56  ;;  %v3266_v13 = vadd.f32 %v869_v59, %v450_v36 }
 0x12f   : > { %v1018_v8 = vmul.f32 0.7978846, %v1002_v2  ;;  %v1003_v23 = vadd.f32 %v987_v50, %v4196_v18  ;;  %v958_v10 = vmul.f32 %v4213_v44, %v4213_v44  ;;  %v4223_v28 = vadd.f32 %v3265_v51, %v4185_v56 }
 0x130   : > { %v1016_v30 = vmul.f32 0.7978846, %v1000_v60  ;;  %v1001_v32 = vadd.f32 %v985_v4, %v4201_v19  ;;  %v956_v20 = vmul.f32 %v4217_v6, %v4217_v6  ;;  %v4229_v25 = vadd.f32 %v3266_v13, %v4185_v56 }
 0x131   : > { %3471 = vtanh.f32 %v1018_v8  ;;  %v1019_v34 = vmul.f32 0.7978846, %v1003_v23  ;;  %v974_v36 = vmul.f32 %v958_v10, %v4213_v44  ;;  %v959_v33 = vmul.f32 %v4223_v28, %v4223_v28 }
 0x132   : > { %v1017_v38 = vmul.f32 0.7978846, %v1001_v32  ;;  %v972_v43 = vmul.f32 %v956_v20, %v4217_v6  ;;  %v957_v45 = vmul.f32 %v4229_v25, %v4229_v25  ;;  %v3045_v55 = vpop.f32.mrb[8].mxu0  ;;  %3473 = vtanh.f32 %v1016_v30 }
 0x133   : > { %3475 = vtanh.f32 %v1019_v34  ;;  %v990_v57 = vmul.f32 0.044715, %v974_v36  ;;  %v975_v58 = vmul.f32 %v959_v33, %v4223_v28  ;;  %v3267_v5 = vadd.f32 %v3045_v55, %v4157_v37  ;;  %v882_v54 = vpop.f32.mrb[9].mxu0 }
 0x134   : > { %v988_v7 = vmul.f32 0.044715, %v972_v43  ;;  %v973_v9 = vmul.f32 %v957_v45, %v4229_v25  ;;  %v3268_v15 = vadd.f32 %v882_v54, %v4162_v40  ;;  %v3046_v17 = vpop.f32.mrb[10].mxu0  ;;  %3477 = vtanh.f32 %v1017_v38 }
 0x135   : > { %v1006_v12 = vadd.f32 %v990_v57, %v4213_v44  ;;  %v991_v21 = vmul.f32 0.044715, %v975_v58  ;;  %v4243_v22 = vadd.f32 %v3267_v5, %v4185_v56  ;;  %v3269_v29 = vadd.f32 %v3046_v17, %v4164_v42  ;;  %v885_v35 = vpop.f32.mrb[11].mxu0 }
 0x136   : > { %v1004_v41 = vadd.f32 %v988_v7, %v4217_v6  ;;  %v989_v37 = vmul.f32 0.044715, %v973_v9  ;;  %v4248_v48 = vadd.f32 %v3268_v15, %v4185_v56  ;;  %v3270_v52 = vadd.f32 %v885_v35, %v4166_v1 }
 0x137   : > { %v1022_v40 = vmul.f32 0.7978846, %v1006_v12  ;;  %v1007_v62 = vadd.f32 %v991_v21, %v4223_v28  ;;  %v962_v63 = vmul.f32 %v4243_v22, %v4243_v22  ;;  %v4255_v26 = vadd.f32 %v3269_v29, %v4185_v56 }
 0x138   : > { %v960_v42 = vmul.f32 %v4248_v48, %v4248_v48  ;;  %v4260_v39 = vadd.f32 %v3270_v52, %v4185_v56  ;;  %v1020_v2 = vmul.f32 0.7978846, %v1004_v41  ;;  %v1005_v50 = vadd.f32 %v989_v37, %v4229_v25 }
 0x139   : > { %v1023_v0 = vmul.f32 0.7978846, %v1007_v62  ;;  %v978_v49 = vmul.f32 %v962_v63, %v4243_v22  ;;  %v963_v1 = vmul.f32 %v4255_v26, %v4255_v26  ;;  %3479 = vtanh.f32 %v1022_v40 }
 0x13a   : > { %v976_v51 = vmul.f32 %v960_v42, %v4248_v48  ;;  %v961_v59 = vmul.f32 %v4260_v39, %v4260_v39  ;;  %v3049_v60 = vpop.f32.mrb[12].mxu0  ;;  %v1021_v7 = vmul.f32 0.7978846, %v1005_v50 }
 0x13b   : > { %v3472_v4 = vpop.eup %3471  ;;  %v994_v13 = vmul.f32 0.044715, %v978_v49  ;;  %v979_v8 = vmul.f32 %v963_v1, %v4255_v26  ;;  %v3271_v23 = vadd.f32 %v3049_v60, %v4174_v46  ;;  %v898_v10 = vpop.f32.mrb[13].mxu0  ;;  %3481 = vtanh.f32 %v1023_v0 }
 0x13c   : > { %v3474_v30 = vpop.eup %3473  ;;  %v1050_v32 = vadd.f32 1.0, %v3472_v4  ;;  %v992_v20 = vmul.f32 0.044715, %v976_v51  ;;  %v977_v34 = vmul.f32 %v961_v59, %v4260_v39  ;;  %v3272_v36 = vadd.f32 %v898_v10, %v4176_v3  ;;  %v3050_v33 = vpop.f32.mrb[14].mxu0 }
 0x13d   : > { %v3476_v38 = vpop.eup %3475  ;;  %v995_v43 = vmul.f32 0.044715, %v979_v8  ;;  %v4274_v45 = vadd.f32 %v3271_v23, %v4185_v56  ;;  %v3273_v55 = vadd.f32 %v3050_v33, %v4178_v47  ;;  %v901_v57 = vpop.f32.mrb[15].mxu0  ;;  %3483 = vtanh.f32 %v1020_v2 }
 0x13e   : > { %v3478_v58 = vpop.eup %3477  ;;  %v1066_v46 = vmul.f32 0.5, %v1050_v32  ;;  %v1051_v5 = vadd.f32 1.0, %v3476_v38  ;;  %v993_v54 = vmul.f32 0.044715, %v977_v34  ;;  %v4280_v3 = vadd.f32 %v3272_v36, %v4185_v56 }
 0x13f   : > { %v966_v9 = vmul.f32 %v4274_v45, %v4274_v45  ;;  %v1010_v17 = vadd.f32 %v994_v13, %v4243_v22  ;;  %v1008_v12 = vadd.f32 %v992_v20, %v4248_v48  ;;  %v1011_v47 = vadd.f32 %v995_v43, %v4255_v26 }
 0x140   : > { %v1067_v15 = vmul.f32 0.5, %v1051_v5  ;;  %v1082_v21 = vmul.f32 %v1066_v46, %v4188_v61  ;;  %v964_v35 = vmul.f32 %v4280_v3, %v4280_v3  ;;  %v4290_v41 = vadd.f32 %v3273_v55, %v4185_v56 }
 0x141   : > { %v982_v29 = vmul.f32 %v966_v9, %v4274_v45  ;;  %v1009_v52 = vadd.f32 %v993_v54, %v4260_v39  ;;  %v3274_v40 = vadd.f32 %v901_v57, %v4180_v53  ;;  %v1048_v62 = vadd.f32 1.0, %v3474_v30 }
 0x142   : > { %v1083_v37 = vmul.f32 %v1067_v15, %v4196_v18  ;;  %v980_v0 = vmul.f32 %v964_v35, %v4280_v3  ;;  %v967_v61 = vmul.f32 %v4290_v41, %v4290_v41  ;;  %v1049_v49 = vadd.f32 1.0, %v3478_v58  ;;  %v3457_v35 = vld [vmem:[%s4781_s3 + $0x10] sm:$0xff]  }
 0x143   : > { %v3480_v63 = vpop.eup %3479  ;;  %v998_v42 = vmul.f32 0.044715, %v982_v29  ;;  %v4299_v1 = vadd.f32 %v3274_v40, %v4185_v56  ;;  %v1064_v2 = vmul.f32 0.5, %v1048_v62  ;;  %3485 = vtanh.f32 %v1021_v7 }
 0x144   : > { %v1097_v50 = vpack.c.bf16 %v1083_v37, %v1082_v21  ;;  %v1024_v51 = vmul.f32 0.7978846, %v1008_v12  ;;  %v996_v59 = vmul.f32 0.044715, %v980_v0  ;;  %v983_v53 = vmul.f32 %v967_v61, %v4290_v41 }
 0x145   : > { %v3482_v18 = vpop.eup %3481  ;;  %v1065_v60 = vmul.f32 0.5, %v1049_v49  ;;  %v1025_v4 = vmul.f32 0.7978846, %v1009_v52  ;;  %v1014_v13 = vadd.f32 %v998_v42, %v4274_v45  ;;  %v965_v8 = vmul.f32 %v4299_v1, %v4299_v1 }
 0x146   : > { %v1054_v23 = vadd.f32 1.0, %v3480_v63  ;;  %v1012_v10 = vadd.f32 %v996_v59, %v4280_v3  ;;  %v999_v30 = vmul.f32 0.044715, %v983_v53  ;;  %v1080_v32 = vmul.f32 %v1064_v2, %v4191_v11  ;;  %v3456_v11 = vld [vmem:[%s4781_s3 + $0x8] sm:$0xff]  }
 0x147   : > { %v1081_v20 = vmul.f32 %v1065_v60, %v4201_v19  ;;  %v3484_v34 = vpop.eup %3483  ;;  %v1026_v36 = vmul.f32 0.7978846, %v1010_v17  ;;  %v981_v33 = vmul.f32 %v965_v8, %v4299_v1  ;;  %v1055_v38 = vadd.f32 1.0, %v3482_v18 }
 0x148   : > { %v1070_v43 = vmul.f32 0.5, %v1054_v23  ;;  %v1027_v55 = vmul.f32 0.7978846, %v1011_v47  ;;  %v1015_v57 = vadd.f32 %v999_v30, %v4290_v41  ;;  %3487 = vtanh.f32 %v1024_v51 }
 0x149   : > { %v1096_v58 = vpack.c.bf16 %v1081_v20, %v1080_v32  ;;  %v1028_v46 = vmul.f32 0.7978846, %v1012_v10  ;;  %v997_v5 = vmul.f32 0.044715, %v981_v33  ;;  %v1071_v54 = vmul.f32 0.5, %v1055_v38  ;;  %v3463_v32 = vld [vmem:[%s4781_s3 + $0x28] sm:$0xff]  }
 0x14a   : > { %v1030_v7 = vmul.f32 0.7978846, %v1014_v13  ;;  %v1052_v19 = vadd.f32 1.0, %v3484_v34  ;;  %3489 = vtanh.f32 %v1025_v4  ;;  %v1086_v15 = vmul.f32 %v1070_v43, %v4213_v44 }
 0x14b   : > { %3163 = vmatprep.mubr.bf16.mxu0 %v1096_v58  ;;  %v1013_v9 = vadd.f32 %v997_v5, %v4299_v1  ;;  %v1087_v17 = vmul.f32 %v1071_v54, %v4223_v28  ;;  %3491 = vtanh.f32 %v1026_v36  ;;  %v1031_v12 = vmul.f32 0.7978846, %v1015_v57 }
 0x14c   : > { %3164 = vmatmul.mubr.bf16.vlgmr.msra.gmra.mrb[16].mxu0 %v1097_v50  ;;  %3493 = vtanh.f32 %v1027_v55  ;;  %v1068_v52 = vmul.f32 0.5, %v1052_v19  ;;  %v3461_v50 = vld [vmem:[%s4781_s3 + $0x20] sm:$0xff]  }
 0x14d   : > { %3180 = vmatpush3.bf16.msra.mxu0 %v4123_v24  ;;  %v3486_v47 = vpop.eup %3485  ;;  %v1029_v21 = vmul.f32 0.7978846, %v1013_v9  ;;  %v1099_v29 = vpack.c.bf16 %v1087_v17, %v1086_v15  ;;  %3495 = vtanh.f32 %v1028_v46  ;;  %v3459_v24 = vld [vmem:[%s4781_s3 + $0x18] sm:$0xff]   ;;  %v3465_v46 = vld [vmem:[%s4781_s3 + $0x30] sm:$0xff]  }
 0x14e   : > { %3181 = vmatprep.subr.bf16.mxu0 %v3456_v11  ;;  %v1053_v37 = vadd.f32 1.0, %v3486_v47  ;;  %3497 = vtanh.f32 %v1030_v7  ;;  %v1084_v40 = vmul.f32 %v1068_v52, %v4217_v6 }
 0x14f   : > { %3499 = vtanh.f32 %v1029_v21 }
 0x150   : > { %v1069_v44 = vmul.f32 0.5, %v1053_v37  ;;  %3501 = vtanh.f32 %v1031_v12 }
 0x151   : > { %3182 = vmatpush3.bf16.msra.mxu0 %v3456_v11 }
 0x152   : > { %3183 = vmatprep.subr.bf16.mxu0 %v3457_v35  ;;  %v3488_v28 = vpop.eup %3487  ;;  %v1085_v62 = vmul.f32 %v1069_v44, %v4229_v25 }
 0x153   : > { %v1056_v63 = vadd.f32 1.0, %v3488_v28 }
 0x154   : > { %v3490_v42 = vpop.eup %3489  ;;  %v1098_v0 = vpack.c.bf16 %v1085_v62, %v1084_v40 }
 0x155   : > { %3184 = vmatpush3.bf16.msra.mxu0 %v3457_v35  ;;  %v3492_v61 = vpop.eup %3491  ;;  %v1057_v49 = vadd.f32 1.0, %v3490_v42  ;;  %v1072_v2 = vmul.f32 0.5, %v1056_v63 }
 0x156   : > { %3185 = vmatprep.subr.bf16.mxu0 %v3459_v24  ;;  %v3494_v18 = vpop.eup %3493  ;;  %3167 = vmatprep.mubr.bf16.mxu0 %v1098_v0  ;;  %v1058_v51 = vadd.f32 1.0, %v3492_v61 }
 0x157   : > { %v3496_v59 = vpop.eup %3495  ;;  %3168 = vmatmul.mubr.bf16.gmra.mrb[20].mxu0 %v1099_v29  ;;  %v1073_v6 = vmul.f32 0.5, %v1057_v49  ;;  %v1059_v53 = vadd.f32 1.0, %v3494_v18  ;;  %v1088_v8 = vmul.f32 %v1072_v2, %v4248_v48 }
 0x158   : > { %v3498_v25 = vpop.eup %3497  ;;  %v1074_v60 = vmul.f32 0.5, %v1058_v51  ;;  %v1060_v4 = vadd.f32 1.0, %v3496_v59 }
 0x159   : > { %3186 = vmatpush3.bf16.msra.mxu0 %v3459_v24  ;;  %v3500_v13 = vpop.eup %3499  ;;  %v1089_v23 = vmul.f32 %v1073_v6, %v4260_v39  ;;  %v1075_v10 = vmul.f32 0.5, %v1059_v53  ;;  %v1062_v30 = vadd.f32 1.0, %v3498_v25 }
 0x15a   : > { %3187 = vmatprep.subr.bf16.mxu0 %v3461_v50  ;;  %v3502_v20 = vpop.eup %3501  ;;  %v1090_v34 = vmul.f32 %v1074_v60, %v4243_v22  ;;  %v1061_v36 = vadd.f32 1.0, %v3500_v13  ;;  %v1076_v33 = vmul.f32 0.5, %v1060_v4 }
 0x15b   : > { %v1100_v38 = vpack.c.bf16 %v1089_v23, %v1088_v8  ;;  %v1091_v43 = vmul.f32 %v1075_v10, %v4255_v26  ;;  %v1063_v55 = vadd.f32 1.0, %v3502_v20  ;;  %v1078_v57 = vmul.f32 0.5, %v1062_v30 }
 0x15c   : > { %v1077_v48 = vmul.f32 0.5, %v1061_v36  ;;  %v1092_v5 = vmul.f32 %v1076_v33, %v4280_v3  ;;  %v3467_v3 = vld [vmem:[%s4781_s3 + $0x38] sm:$0xff]  }
 0x15d   : > { %3188 = vmatpush3.bf16.msra.mxu0 %v3461_v50  ;;  %3171 = vmatprep.mubr.bf16.mxu0 %v1100_v38  ;;  %v1101_v39 = vpack.c.bf16 %v1091_v43, %v1090_v34  ;;  %v1079_v58 = vmul.f32 0.5, %v1063_v55  ;;  %v1094_v54 = vmul.f32 %v1078_v57, %v4274_v45 }
 0x15e   : > { %3189 = vmatprep.subr.bf16.mxu0 %v3463_v32  ;;  %v1093_v22 = vmul.f32 %v1077_v48, %v4299_v1 }
 0x15f   : > { %3172 = vmatmul.mubr.bf16.gmra.mrb[24].mxu0 %v1101_v39  ;;  %v1095_v26 = vmul.f32 %v1079_v58, %v4290_v41 }
 0x160   : > { %v1102_v11 = vpack.c.bf16 %v1093_v22, %v1092_v5 }
 0x161   : > { %v3133_v7 = vpop.f32.mrb[16].mxu1  ;;  %3190 = vmatpush3.bf16.msra.mxu0 %v3463_v32  ;;  %v1103_v19 = vpack.c.bf16 %v1095_v26, %v1094_v54 }
 0x162   : > { %v4343_v9 = vadd.f32 %v3133_v7, %v4185_v56  ;;  %v1410_v15 = vpop.f32.mrb[17].mxu1  ;;  %3191 = vmatprep.subr.bf16.mxu0 %v3465_v46  ;;  %3175 = vmatprep.mubr.bf16.mxu0 %v1102_v11 }
 0x163   : > { %v4349_v1 = vadd.f32 %v4185_v56, %v1410_v15  ;;  %v3134_v45 = vpop.f32.mrb[18].mxu1 }
 0x164   : > { %v1507_v41 = vmul.f32 %v4343_v9, %v4343_v9  ;;  %v4354_v17 = vadd.f32 %v3134_v45, %v4185_v56  ;;  %v1413_v12 = vpop.f32.mrb[19].mxu1 }
 0x165   : > { %v1505_v47 = vmul.f32 %v4349_v1, %v4349_v1  ;;  %v4359_v21 = vadd.f32 %v4185_v56, %v1413_v12  ;;  %3192 = vmatpush3.bf16.msra.mxu0 %v3465_v46 }
 0x166   : > { %v1523_v29 = vmul.f32 %v1507_v41, %v4343_v9  ;;  %v1508_v35 = vmul.f32 %v4354_v17, %v4354_v17  ;;  %3193 = vmatprep.subr.bf16.mxu0 %v3467_v3 }
 0x167   : > { %v1521_v37 = vmul.f32 %v1505_v47, %v4349_v1  ;;  %v1506_v52 = vmul.f32 %v4359_v21, %v4359_v21  ;;  %3176 = vmatmul.mubr.bf16.gmra.mrb[28].mxu0 %v1103_v19 }
 0x168   : > { %v1539_v44 = vmul.f32 0.044715, %v1523_v29  ;;  %v1524_v24 = vmul.f32 %v1508_v35, %v4354_v17 }
 0x169   : > { %v1537_v28 = vmul.f32 0.044715, %v1521_v37  ;;  %v1522_v40 = vmul.f32 %v1506_v52, %v4359_v21  ;;  %v3137_v62 = vpop.f32.mrb[20].mxu1  ;;  %3194 = vmatpush3.bf16.msra.mxu0 %v3467_v3 }
 0x16a   : > { %v1555_v63 = vadd.f32 %v1539_v44, %v4343_v9  ;;  %v1540_v42 = vmul.f32 0.044715, %v1524_v24  ;;  %v4371_v0 = vadd.f32 %v3137_v62, %v4185_v56  ;;  %v1426_v61 = vpop.f32.mrb[21].mxu1  ;;  %3211 = vmatprep.subr.bf16.mxu0 %v4129_v27 }
 0x16b   : > { %v1553_v49 = vadd.f32 %v1537_v28, %v4349_v1  ;;  %v1538_v2 = vmul.f32 0.044715, %v1522_v40  ;;  %v4376_v50 = vadd.f32 %v4185_v56, %v1426_v61  ;;  %v3138_v18 = vpop.f32.mrb[22].mxu1 }
 0x16c   : > { %v1571_v51 = vmul.f32 0.7978846, %v1555_v63  ;;  %v1556_v59 = vadd.f32 %v1540_v42, %v4354_v17  ;;  %v1511_v6 = vmul.f32 %v4371_v0, %v4371_v0  ;;  %v4382_v53 = vadd.f32 %v3138_v18, %v4185_v56  ;;  %v1429_v25 = vpop.f32.mrb[23].mxu1 }
 0x16d   : > { %v1569_v60 = vmul.f32 0.7978846, %v1553_v49  ;;  %v1554_v4 = vadd.f32 %v1538_v2, %v4359_v21  ;;  %v1509_v13 = vmul.f32 %v4376_v50, %v4376_v50  ;;  %v4388_v8 = vadd.f32 %v4185_v56, %v1429_v25 }
 0x16e   : > { %3503 = vtanh.f32 %v1571_v51  ;;  %v1572_v23 = vmul.f32 0.7978846, %v1556_v59  ;;  %v1527_v10 = vmul.f32 %v1511_v6, %v4371_v0  ;;  %v1512_v30 = vmul.f32 %v4382_v53, %v4382_v53 }
 0x16f   : > { %3505 = vtanh.f32 %v1569_v60  ;;  %v1570_v32 = vmul.f32 0.7978846, %v1554_v4  ;;  %v1525_v20 = vmul.f32 %v1509_v13, %v4376_v50  ;;  %v1510_v34 = vmul.f32 %v4388_v8, %v4388_v8 }
 0x170   : > { %3507 = vtanh.f32 %v1572_v23  ;;  %v1543_v36 = vmul.f32 0.044715, %v1527_v10  ;;  %v1528_v33 = vmul.f32 %v1512_v30, %v4382_v53 }
 0x171   : > { %3509 = vtanh.f32 %v1570_v32  ;;  %v1541_v38 = vmul.f32 0.044715, %v1525_v20  ;;  %v1526_v43 = vmul.f32 %v1510_v34, %v4388_v8  ;;  %v3141_v55 = vpop.f32.mrb[24].mxu1 }
 0x172   : > { %v1559_v57 = vadd.f32 %v1543_v36, %v4371_v0  ;;  %v1544_v48 = vmul.f32 0.044715, %v1528_v33  ;;  %v4400_v39 = vadd.f32 %v3141_v55, %v4185_v56  ;;  %v1442_v58 = vpop.f32.mrb[25].mxu1 }
 0x173   : > { %v1557_v46 = vadd.f32 %v1541_v38, %v4376_v50  ;;  %v1542_v5 = vmul.f32 0.044715, %v1526_v43  ;;  %v4404_v22 = vadd.f32 %v4185_v56, %v1442_v58  ;;  %v3142_v54 = vpop.f32.mrb[26].mxu1 }
 0x174   : > { %v1575_v26 = vmul.f32 0.7978846, %v1559_v57  ;;  %v1560_v11 = vadd.f32 %v1544_v48, %v4382_v53  ;;  %v1515_v7 = vmul.f32 %v4400_v39, %v4400_v39  ;;  %v4410_v19 = vadd.f32 %v3142_v54, %v4185_v56  ;;  %v1445_v15 = vpop.f32.mrb[27].mxu1 }
 0x175   : > { %v1573_v3 = vmul.f32 0.7978846, %v1557_v46  ;;  %v1558_v45 = vadd.f32 %v1542_v5, %v4388_v8  ;;  %v1513_v41 = vmul.f32 %v4404_v22, %v4404_v22  ;;  %v4416_v12 = vadd.f32 %v4185_v56, %v1445_v15 }
 0x176   : > { %3511 = vtanh.f32 %v1575_v26  ;;  %v1576_v47 = vmul.f32 0.7978846, %v1560_v11  ;;  %v1531_v29 = vmul.f32 %v1515_v7, %v4400_v39  ;;  %v1516_v35 = vmul.f32 %v4410_v19, %v4410_v19 }
 0x177   : > { %3513 = vtanh.f32 %v1573_v3  ;;  %v1574_v37 = vmul.f32 0.7978846, %v1558_v45  ;;  %v1529_v52 = vmul.f32 %v1513_v41, %v4404_v22  ;;  %v1514_v44 = vmul.f32 %v4416_v12, %v4416_v12 }
 0x178   : > { %v3504_v24 = vpop.eup %3503  ;;  %3515 = vtanh.f32 %v1576_v47  ;;  %v1547_v28 = vmul.f32 0.044715, %v1531_v29  ;;  %v1532_v40 = vmul.f32 %v1516_v35, %v4410_v19 }
 0x179   : > { %v3506_v62 = vpop.eup %3505  ;;  %v1603_v63 = vadd.f32 1.0, %v3504_v24  ;;  %3517 = vtanh.f32 %v1574_v37  ;;  %v1545_v42 = vmul.f32 0.044715, %v1529_v52  ;;  %v1530_v61 = vmul.f32 %v1514_v44, %v4416_v12  ;;  %v3145_v49 = vpop.f32.mrb[28].mxu1 }
 0x17a   : > { %v3508_v2 = vpop.eup %3507  ;;  %v1601_v18 = vadd.f32 1.0, %v3506_v62  ;;  %v1563_v51 = vadd.f32 %v1547_v28, %v4400_v39  ;;  %v1548_v59 = vmul.f32 0.044715, %v1532_v40  ;;  %v4428_v6 = vadd.f32 %v3145_v49, %v4185_v56  ;;  %v1458_v25 = vpop.f32.mrb[29].mxu1 }
 0x17b   : > { %v3510_v60 = vpop.eup %3509  ;;  %v1619_v4 = vmul.f32 0.5, %v1603_v63  ;;  %v1604_v13 = vadd.f32 1.0, %v3508_v2  ;;  %v1561_v23 = vadd.f32 %v1545_v42, %v4404_v22  ;;  %v1546_v10 = vmul.f32 0.044715, %v1530_v61  ;;  %v3146_v30 = vpop.f32.mrb[30].mxu1 }
 0x17c   : > { %v1617_v32 = vmul.f32 0.5, %v1601_v18  ;;  %v1602_v20 = vadd.f32 1.0, %v3510_v60  ;;  %v1579_v34 = vmul.f32 0.7978846, %v1563_v51  ;;  %v1564_v36 = vadd.f32 %v1548_v59, %v4410_v19  ;;  %v1461_v33 = vpop.f32.mrb[31].mxu1 }
 0x17d   : > { %v1635_v38 = vmul.f32 %v1619_v4, %v4343_v9  ;;  %v1620_v43 = vmul.f32 0.5, %v1604_v13  ;;  %v1577_v55 = vmul.f32 0.7978846, %v1561_v23  ;;  %v1562_v57 = vadd.f32 %v1546_v10, %v4416_v12 }
 0x17e   : > { %v1633_v48 = vmul.f32 %v1617_v32, %v4349_v1  ;;  %v1618_v58 = vmul.f32 0.5, %v1602_v20  ;;  %3519 = vtanh.f32 %v1579_v34  ;;  %v1580_v46 = vmul.f32 0.7978846, %v1564_v36 }
 0x17f   : > { %v1636_v5 = vmul.f32 %v1620_v43, %v4354_v17  ;;  %3521 = vtanh.f32 %v1577_v55  ;;  %v1578_v54 = vmul.f32 0.7978846, %v1562_v57  ;;  %v1519_v26 = vmul.f32 %v4428_v6, %v4428_v6 }
 0x180   : > { %v3512_v11 = vpop.eup %3511  ;;  %v1634_v7 = vmul.f32 %v1618_v58, %v4359_v21  ;;  %3523 = vtanh.f32 %v1580_v46  ;;  %v4440_v9 = vadd.f32 %v4185_v56, %v1458_v25  ;;  %v4443_v15 = vadd.f32 %v3146_v30, %v4185_v56 }
 0x181   : > { %v3514_v1 = vpop.eup %3513  ;;  %v4445_v3 = vpack.c.bf16 %v1636_v5, %v1635_v38  ;;  %v1607_v17 = vadd.f32 1.0, %v3512_v11  ;;  %3525 = vtanh.f32 %v1578_v54  ;;  %v1535_v45 = vmul.f32 %v1519_v26, %v4428_v6 }
 0x182   : > { %v3516_v41 = vpop.eup %3515  ;;  %v1605_v47 = vadd.f32 1.0, %v3514_v1  ;;  %v1517_v21 = vmul.f32 %v4440_v9, %v4440_v9  ;;  %v1520_v29 = vmul.f32 %v4443_v15, %v4443_v15  ;;  %v4453_v35 = vadd.f32 %v4185_v56, %v1461_v33 }
 0x183   : > { %v3518_v37 = vpop.eup %3517  ;;  %v1623_v52 = vmul.f32 0.5, %v1607_v17  ;;  %v1608_v44 = vadd.f32 1.0, %v3516_v41  ;;  %v1551_v24 = vmul.f32 0.044715, %v1535_v45  ;;  %v4455_v28 = vpack.c.bf16 %v1634_v7, %v1633_v48 }
 0x184   : > { %v1621_v40 = vmul.f32 0.5, %v1605_v47  ;;  %v1606_v62 = vadd.f32 1.0, %v3518_v37  ;;  %v1533_v63 = vmul.f32 %v1517_v21, %v4440_v9  ;;  %v1536_v42 = vmul.f32 %v1520_v29, %v4443_v15 }
 0x185   : > { %v1639_v61 = vmul.f32 %v1623_v52, %v4371_v0  ;;  %v1624_v49 = vmul.f32 0.5, %v1608_v44  ;;  %v1567_v2 = vadd.f32 %v1551_v24, %v4428_v6  ;;  %v1518_v56 = vmul.f32 %v4453_v35, %v4453_v35 }
 0x186   : > { %v1637_v18 = vmul.f32 %v1621_v40, %v4376_v50  ;;  %v1622_v51 = vmul.f32 0.5, %v1606_v62  ;;  %v1549_v59 = vmul.f32 0.044715, %v1533_v63  ;;  %v1552_v25 = vmul.f32 0.044715, %v1536_v42 }
 0x187   : > { %v1640_v60 = vmul.f32 %v1624_v49, %v4382_v53  ;;  %v1583_v4 = vmul.f32 0.7978846, %v1567_v2  ;;  %v1534_v13 = vmul.f32 %v1518_v56, %v4453_v35  ;;  %v1659_v23 = vshrl.u32 %v4455_v28, 16 }
 0x188   : > { %v3520_v10 = vpop.eup %3519  ;;  %v1638_v0 = vmul.f32 %v1622_v51, %v4388_v8  ;;  %v1565_v30 = vadd.f32 %v1549_v59, %v4440_v9  ;;  %v1568_v32 = vadd.f32 %v1552_v25, %v4443_v15  ;;  %v1662_v20 = vshll.u32 %v4455_v28, 16 }
 0x189   : > { %v3522_v50 = vpop.eup %3521  ;;  %v4471_v34 = vpack.c.bf16 %v1640_v60, %v1639_v61  ;;  %v1611_v36 = vadd.f32 1.0, %v3520_v10  ;;  %3527 = vtanh.f32 %v1583_v4  ;;  %v1550_v53 = vmul.f32 0.044715, %v1534_v13 }
 0x18a   : > { %v3524_v33 = vpop.eup %3523  ;;  %v4473_v38 = vpack.c.bf16 %v1638_v0, %v1637_v18  ;;  %v1581_v43 = vmul.f32 0.7978846, %v1565_v30  ;;  %v1584_v55 = vmul.f32 0.7978846, %v1568_v32  ;;  %v1661_v57 = vrot.slane %v1659_v23, 7 }
 0x18b   : > { %v3526_v48 = vpop.eup %3525  ;;  %v1627_v8 = vmul.f32 0.5, %v1611_v36  ;;  %v1612_v58 = vadd.f32 1.0, %v3524_v33  ;;  %v1566_v46 = vadd.f32 %v1550_v53, %v4453_v35  ;;  %v1666_v54 = vshrl.u32 %v4445_v3, 16 }
 0x18c   : > { %3529 = vtanh.f32 %v1581_v43  ;;  %v1664_v26 = vor.u32 %v1662_v20, %v1661_v57  ;;  %v1674_v11 = vshrl.u32 %v4473_v38, 16  ;;  %v1669_v17 = vshll.u32 %v4445_v3, 16 }
 0x18d   : > { %v1628_v7 = vmul.f32 0.5, %v1612_v58  ;;  %3531 = vtanh.f32 %v1584_v55  ;;  %v1582_v1 = vmul.f32 0.7978846, %v1566_v46  ;;  %v1668_v41 = vrot.slane %v1666_v54, 7 }
 0x18e   : > { %v1731_v45 = vsel %vm4478_vm3, 0, %v1664_v26  ;;  %v1676_v47 = vrot.slane %v1674_v11, 7  ;;  %v1677_v21 = vshll.u32 %v4473_v38, 16  ;;  %v1643_v29 = vmul.f32 %v1627_v8, %v4400_v39  ;;  %v3568_v26 = vld [vmem:[%s4781_s3 + $0x98] sm:$0xff]  }
 0x18f   : > { %v1644_v37 = vmul.f32 %v1628_v7, %v4410_v19  ;;  %3533 = vtanh.f32 %v1582_v1  ;;  %3195 = vmatprep.mubr.bf16.mxu0 %v1731_v45  ;;  %v1682_v52 = vshrl.u32 %v4471_v34, 16  ;;  %v1671_v44 = vor.u32 %v1669_v17, %v1668_v41 }
 0x190   : > { %v1679_v24 = vor.u32 %v1677_v21, %v1676_v47  ;;  %v1609_v40 = vadd.f32 1.0, %v3522_v50  ;;  %v1610_v62 = vadd.f32 1.0, %v3526_v48  ;;  %v1685_v61 = vshll.u32 %v4471_v34, 16 }
 0x191   : > { %v1654_v63 = vpack.c.bf16 %v1644_v37, %v1643_v29  ;;  %v1684_v42 = vrot.slane %v1682_v52, 7  ;;  %v1672_v49 = vsel %vm1657_vm1, %v1661_v57, %v1671_v44  ;;  %v3571_v37 = vld [vmem:[%s4781_s3 + $0xb0] sm:$0xff]   ;;  %v3572_v52 = vld [vmem:[%s4781_s3 + $0xb8] sm:$0xff]  }
 0x192   : > { %v1680_v2 = vsel %vm1657_vm1, %v1668_v41, %v1679_v24  ;;  %v1625_v56 = vmul.f32 0.5, %v1609_v40  ;;  %v1626_v39 = vmul.f32 0.5, %v1610_v62  ;;  %3196 = vmatmul.mubr.bf16.vlgmr.msra.gmra.mrb[16].mxu0 %v1672_v49  ;;  %v3570_v41 = vld [vmem:[%s4781_s3 + $0xa8] sm:$0xff]  }
 0x193   : > { %v3528_v18 = vpop.eup %3527  ;;  %v1687_v19 = vor.u32 %v1685_v61, %v1684_v42  ;;  %v1698_v51 = vshrl.u32 %v1654_v63, 16  ;;  %3212 = vmatpush3.bf16.msra.mxu0 %v4129_v27  ;;  %3199 = vmatprep.mubr.bf16.mxu0 %v1680_v2  ;;  %v1701_v0 = vshll.u32 %v1654_v63, 16 }
 0x194   : > { %v1641_v59 = vmul.f32 %v1625_v56, %v4404_v22  ;;  %v1642_v25 = vmul.f32 %v1626_v39, %v4416_v12  ;;  %v1615_v60 = vadd.f32 1.0, %v3528_v18  ;;  %3213 = vmatprep.subr.bf16.mxu0 %v4136_v31 }
 0x195   : > { %v1688_v4 = vsel %vm1657_vm1, %v1676_v47, %v1687_v19  ;;  %v1700_v13 = vrot.slane %v1698_v51, 7 }
 0x196   : > { %v3530_v23 = vpop.eup %3529  ;;  %v1653_v10 = vpack.c.bf16 %v1642_v25, %v1641_v59  ;;  %v1631_v20 = vmul.f32 0.5, %v1615_v60 }
 0x197   : > { %v3532_v30 = vpop.eup %3531  ;;  %v1613_v32 = vadd.f32 1.0, %v3530_v23  ;;  %3214 = vmatpush3.bf16.msra.mxu0 %v4136_v31  ;;  %v1703_v50 = vor.u32 %v1701_v0, %v1700_v13  ;;  %v3567_v31 = vld [vmem:[%s4781_s3 + $0x90] sm:$0xff]  }
 0x198   : > { %v1690_v27 = vshrl.u32 %v1653_v10, 16  ;;  %3235 = vmatprep.mubr.bf16.mxu1 %v1653_v10  ;;  %v1616_v22 = vadd.f32 1.0, %v3532_v30  ;;  %3215 = vmatprep.subr.bf16.mxu0 %v4143_v14  ;;  %v1693_v12 = vshll.u32 %v1653_v10, 16  ;;  %v1647_v57 = vmul.f32 %v1631_v20, %v4428_v6 }
 0x199   : > { %v3534_v36 = vpop.eup %3533  ;;  %3236 = vmatmul.mubr.bf16.vlgmr.msra.gmra.mrb[32].mxu1 %v1654_v63  ;;  %v1629_v43 = vmul.f32 0.5, %v1613_v32 }
 0x19a   : > { %v1692_v53 = vrot.slane %v1690_v27, 7  ;;  %v1614_v33 = vadd.f32 1.0, %v3534_v36  ;;  %v1632_v55 = vmul.f32 0.5, %v1616_v22  ;;  %3200 = vmatmul.mubr.bf16.gmra.mrb[20].mxu0 %v1688_v4 }
 0x19b   : > { %3216 = vmatpush3.bf16.msra.mxu0 %v3567_v31  ;;  %v1645_v5 = vmul.f32 %v1629_v43, %v4440_v9 }
 0x19c   : > { %v1695_v48 = vor.u32 %v1693_v12, %v1692_v53  ;;  %v1704_v8 = vsel %vm1657_vm1, %v1692_v53, %v1703_v50  ;;  %v1630_v58 = vmul.f32 0.5, %v1614_v33  ;;  %v1648_v14 = vmul.f32 %v1632_v55, %v4443_v15  ;;  %3217 = vmatprep.subr.bf16.mxu0 %v4150_v16  ;;  %v3569_v15 = vld [vmem:[%s4781_s3 + $0xa0] sm:$0xff]  }
 0x19e   : > { %v1696_v46 = vsel %vm1657_vm1, %v1684_v42, %v1695_v48  ;;  %v1646_v54 = vmul.f32 %v1630_v58, %v4453_v35  ;;  %v1656_v6 = vpack.c.bf16 %v1648_v14, %v1647_v57 }
 0x19f   : > { %3203 = vmatprep.mubr.bf16.mxu0 %v1696_v46  ;;  %3218 = vmatpush3.bf16.msra.mxu0 %v3568_v26 }
 0x1a0   : > { %v1655_v11 = vpack.c.bf16 %v1646_v54, %v1645_v5  ;;  %v1714_v7 = vshrl.u32 %v1656_v6, 16  ;;  %3219 = vmatprep.subr.bf16.mxu0 %v3569_v15  ;;  %v1717_v9 = vshll.u32 %v1656_v6, 16 }
 0x1a2   : > { %v1706_v16 = vshrl.u32 %v1655_v11, 16  ;;  %3239 = vmatprep.mubr.bf16.mxu1 %v1655_v11  ;;  %v1716_v1 = vrot.slane %v1714_v7, 7  ;;  %3204 = vmatmul.mubr.bf16.gmra.mrb[24].mxu0 %v1704_v8  ;;  %v1709_v17 = vshll.u32 %v1655_v11, 16 }
 0x1a3   : > { %3240 = vmatmul.mubr.bf16.gmra.mrb[36].mxu1 %v1656_v6  ;;  %3220 = vmatpush3.bf16.msra.mxu0 %v3569_v15 }
 0x1a4   : > { %v1708_v35 = vrot.slane %v1706_v16, 7  ;;  %v1719_v45 = vor.u32 %v1717_v9, %v1716_v1  ;;  %3221 = vmatprep.subr.bf16.mxu0 %v3570_v41 }
 0x1a6   : > { %v1711_v47 = vor.u32 %v1709_v17, %v1708_v35  ;;  %v1720_v21 = vsel %vm1657_vm1, %v1708_v35, %v1719_v45 }
 0x1a7   : > { %3222 = vmatpush3.bf16.msra.mxu0 %v3570_v41 }
 0x1a8   : > { %v1712_v29 = vsel %vm1657_vm1, %v1700_v13, %v1711_v47  ;;  %3223 = vmatprep.subr.bf16.mxu0 %v3571_v37 }
 0x1a9   : > { %3207 = vmatprep.mubr.bf16.mxu0 %v1712_v29 }
 0x1aa   : > { %3208 = vmatmul.mubr.bf16.gmra.mrb[28].mxu0 %v1720_v21 }
 0x1ab   : > { %3224 = vmatpush3.bf16.msra.mxu0 %v3571_v37  ;;  %3227 = vmatprep.mubr.bf16.mxu0 %v4455_v28  ;;  %v4535_v28 = vld [vmem:[%s4782_s4] ss:$0 sm:$0xff] }
 0x1ac   : > { %3225 = vmatprep.subr.bf16.mxu0 %v3572_v52 }
 0x1af   : > { %3226 = vmatpush3.bf16.msra.mxu0 %v3572_v52 }
 0x1b2   : > { %3228 = vmatmul.mubr.bf16.vlgmr.msra.gmra.mrb[16].mxu0 %v4445_v3 }
 0x1b3   : > { %3231 = vmatprep.mubr.bf16.mxu0 %v4473_v38 }
 0x1ba   : > { %3232 = vmatmul.mubr.bf16.gmra.mrb[20].mxu0 %v4471_v34 }
 0x26c   : > { %v3237_v44 = vpop.f32.mrb[32].mxu1 }
 0x26d   : > { %v2186_v24 = vpop.f32.mrb[33].mxu1 }
 0x26e   : > { %v3238_v40 = vpop.f32.mrb[34].mxu1 }
 0x26f   : > { %v2189_v62 = vpop.f32.mrb[35].mxu1 }
 0x275   : > { %v3205_v63 = vpop.f32.mrb[24].mxu0 }
 0x276   : > { %v3241_v42 = vpop.f32.mrb[36].mxu1  ;;  %v3275_v61 = vadd.f32 %v3237_v44, %v3205_v63  ;;  %v2024_v49 = vpop.f32.mrb[25].mxu0 }
 0x277   : > { %v2202_v2 = vpop.f32.mrb[37].mxu1  ;;  %v3276_v56 = vadd.f32 %v2186_v24, %v2024_v49  ;;  %v3206_v3 = vpop.f32.mrb[26].mxu0 }
 0x278   : > { %v3242_v39 = vpop.f32.mrb[38].mxu1  ;;  %v4538_v38 = vadd.f32 %v3275_v61, %v4535_v28  ;;  %v3277_v34 = vadd.f32 %v3238_v40, %v3206_v3  ;;  %v2027_v18 = vpop.f32.mrb[27].mxu0 }
 0x279   : > { %v2205_v19 = vpop.f32.mrb[39].mxu1  ;;  %v4541_v51 = vadd.f32 %v3276_v56, %v4535_v28  ;;  %v3278_v59 = vadd.f32 %v2189_v62, %v2027_v18 }
 0x27a   : > { %v2266_v25 = vmul.f32 %v4538_v38, %v4538_v38  ;;  %v4546_v60 = vadd.f32 %v3277_v34, %v4535_v28 }
 0x27b   : > { %v2264_v4 = vmul.f32 %v4541_v51, %v4541_v51  ;;  %v4551_v13 = vadd.f32 %v3278_v59, %v4535_v28 }
 0x27c   : > { %v2282_v23 = vmul.f32 %v2266_v25, %v4538_v38  ;;  %v2267_v10 = vmul.f32 %v4546_v60, %v4546_v60 }
 0x27d   : > { %v2280_v0 = vmul.f32 %v2264_v4, %v4541_v51  ;;  %v2265_v30 = vmul.f32 %v4551_v13, %v4551_v13  ;;  %v3209_v32 = vpop.f32.mrb[28].mxu0 }
 0x27e   : > { %v2298_v20 = vmul.f32 0.044715, %v2282_v23  ;;  %v2283_v27 = vmul.f32 %v2267_v10, %v4546_v60  ;;  %v3279_v50 = vadd.f32 %v3241_v42, %v3209_v32  ;;  %v2040_v22 = vpop.f32.mrb[29].mxu0 }
 0x27f   : > { %v2296_v36 = vmul.f32 0.044715, %v2280_v0  ;;  %v2281_v12 = vmul.f32 %v2265_v30, %v4551_v13  ;;  %v3280_v53 = vadd.f32 %v2202_v2, %v2040_v22  ;;  %v3210_v33 = vpop.f32.mrb[30].mxu0 }
 0x280   : > { %v2314_v43 = vadd.f32 %v2298_v20, %v4538_v38  ;;  %v2299_v55 = vmul.f32 0.044715, %v2283_v27  ;;  %v4563_v57 = vadd.f32 %v3279_v50, %v4535_v28  ;;  %v3281_v31 = vadd.f32 %v3242_v39, %v3210_v33  ;;  %v2043_v48 = vpop.f32.mrb[31].mxu0 }
 0x281   : > { %v2312_v8 = vadd.f32 %v2296_v36, %v4541_v51  ;;  %v2297_v58 = vmul.f32 0.044715, %v2281_v12  ;;  %v4567_v14 = vadd.f32 %v3280_v53, %v4535_v28  ;;  %v3282_v46 = vadd.f32 %v2205_v19, %v2043_v48 }
 0x282   : > { %v2330_v5 = vmul.f32 0.7978846, %v2314_v43  ;;  %v2315_v54 = vadd.f32 %v2299_v55, %v4546_v60  ;;  %v2270_v6 = vmul.f32 %v4563_v57, %v4563_v57  ;;  %v4573_v26 = vadd.f32 %v3281_v31, %v4535_v28 }
 0x283   : > { %v2328_v11 = vmul.f32 0.7978846, %v2312_v8  ;;  %v2313_v7 = vadd.f32 %v2297_v58, %v4551_v13  ;;  %v2268_v15 = vmul.f32 %v4567_v14, %v4567_v14  ;;  %v4579_v16 = vadd.f32 %v3282_v46, %v4535_v28 }
 0x284   : > { %3535 = vtanh.f32 %v2330_v5  ;;  %v2331_v1 = vmul.f32 0.7978846, %v2315_v54  ;;  %v2286_v9 = vmul.f32 %v2270_v6, %v4563_v57  ;;  %v2271_v35 = vmul.f32 %v4573_v26, %v4573_v26 }
 0x285   : > { %3537 = vtanh.f32 %v2328_v11  ;;  %v2329_v17 = vmul.f32 0.7978846, %v2313_v7  ;;  %v2284_v45 = vmul.f32 %v2268_v15, %v4567_v14  ;;  %v2269_v41 = vmul.f32 %v4579_v16, %v4579_v16  ;;  %v3229_v47 = vpop.f32.mrb[16].mxu0 }
 0x286   : > { %3539 = vtanh.f32 %v2331_v1  ;;  %v2302_v21 = vmul.f32 0.044715, %v2286_v9  ;;  %v2287_v29 = vmul.f32 %v2271_v35, %v4573_v26  ;;  %v4589_v37 = vadd.f32 %v3229_v47, %v4535_v28  ;;  %v2154_v52 = vpop.f32.mrb[17].mxu0 }
 0x287   : > { %3541 = vtanh.f32 %v2329_v17  ;;  %v2300_v44 = vmul.f32 0.044715, %v2284_v45  ;;  %v2285_v24 = vmul.f32 %v2269_v41, %v4579_v16  ;;  %v4593_v40 = vadd.f32 %v4535_v28, %v2154_v52  ;;  %v3230_v62 = vpop.f32.mrb[18].mxu0  ;;  %v2410_v41 = vld [vmem:[%s4783_s5 + $0x50] sm:$0xff] }
 0x288   : > { %v2318_v63 = vadd.f32 %v2302_v21, %v4563_v57  ;;  %v2303_v42 = vmul.f32 0.044715, %v2287_v29  ;;  %v2258_v61 = vmul.f32 %v4589_v37, %v4589_v37  ;;  %v4599_v49 = vadd.f32 %v3230_v62, %v4535_v28  ;;  %v2157_v2 = vpop.f32.mrb[19].mxu0 }
 0x289   : > { %v2316_v56 = vadd.f32 %v2300_v44, %v4567_v14  ;;  %v2301_v3 = vmul.f32 0.044715, %v2285_v24  ;;  %v2256_v39 = vmul.f32 %v4593_v40, %v4593_v40  ;;  %v4605_v34 = vadd.f32 %v4535_v28, %v2157_v2  ;;  %v2408_v44 = vld [vmem:[%s4783_s5 + $0x40] sm:$0xff] }
 0x28a   : > { %v2334_v18 = vmul.f32 0.7978846, %v2318_v63  ;;  %v2319_v19 = vadd.f32 %v2303_v42, %v4573_v26  ;;  %v2274_v59 = vmul.f32 %v2258_v61, %v4589_v37  ;;  %v2259_v25 = vmul.f32 %v4599_v49, %v4599_v49  ;;  %v2411_v42 = vld [vmem:[%s4783_s5 + $0x58] sm:$0xff] }
 0x28b   : > { %v2332_v4 = vmul.f32 0.7978846, %v2316_v56  ;;  %v2317_v23 = vadd.f32 %v2301_v3, %v4579_v16  ;;  %v2272_v10 = vmul.f32 %v2256_v39, %v4593_v40  ;;  %v2257_v0 = vmul.f32 %v4605_v34, %v4605_v34  ;;  %v2409_v3 = vld [vmem:[%s4783_s5 + $0x48] sm:$0xff] }
 0x28c   : > { %3543 = vtanh.f32 %v2334_v18  ;;  %v2335_v30 = vmul.f32 0.7978846, %v2319_v19  ;;  %v2290_v32 = vmul.f32 0.044715, %v2274_v59  ;;  %v2275_v20 = vmul.f32 %v2259_v25, %v4599_v49 }
 0x28d   : > { %3545 = vtanh.f32 %v2332_v4  ;;  %v2333_v27 = vmul.f32 0.7978846, %v2317_v23  ;;  %v2288_v50 = vmul.f32 0.044715, %v2272_v10  ;;  %v2273_v22 = vmul.f32 %v2257_v0, %v4605_v34  ;;  %v3233_v36 = vpop.f32.mrb[20].mxu0 }
 0x28e   : > { %v3536_v12 = vpop.eup %3535  ;;  %3547 = vtanh.f32 %v2335_v30  ;;  %v2306_v53 = vadd.f32 %v2290_v32, %v4589_v37  ;;  %v2291_v33 = vmul.f32 0.044715, %v2275_v20  ;;  %v4619_v43 = vadd.f32 %v3233_v36, %v4535_v28  ;;  %v2170_v55 = vpop.f32.mrb[21].mxu0 }
 0x28f   : > { %v3538_v31 = vpop.eup %3537  ;;  %v2362_v48 = vadd.f32 1.0, %v3536_v12  ;;  %3549 = vtanh.f32 %v2333_v27  ;;  %v2304_v8 = vadd.f32 %v2288_v50, %v4593_v40  ;;  %v2289_v58 = vmul.f32 0.044715, %v2273_v22  ;;  %v3234_v46 = vpop.f32.mrb[22].mxu0 }
 0x290   : > { %v3540_v5 = vpop.eup %3539  ;;  %v2360_v54 = vadd.f32 1.0, %v3538_v31  ;;  %v2322_v6 = vmul.f32 0.7978846, %v2306_v53  ;;  %v2307_v11 = vadd.f32 %v2291_v33, %v4599_v49  ;;  %v2262_v7 = vmul.f32 %v4619_v43, %v4619_v43  ;;  %v2173_v15 = vpop.f32.mrb[23].mxu0 }
 0x291   : > { %v3542_v1 = vpop.eup %3541  ;;  %v2378_v9 = vmul.f32 0.5, %v2362_v48  ;;  %v2363_v35 = vadd.f32 1.0, %v3540_v5  ;;  %v2320_v17 = vmul.f32 0.7978846, %v2304_v8  ;;  %v2305_v45 = vadd.f32 %v2289_v58, %v4605_v34  ;;  %v2412_v58 = vld [vmem:[%s4783_s5 + $0x60] sm:$0xff] }
 0x292   : > { %v2376_v47 = vmul.f32 0.5, %v2360_v54  ;;  %v2361_v21 = vadd.f32 1.0, %v3542_v1  ;;  %3551 = vtanh.f32 %v2322_v6  ;;  %v2323_v29 = vmul.f32 0.7978846, %v2307_v11 }
 0x293   : > { %v2394_v52 = vmul.f32 %v2378_v9, %v4538_v38  ;;  %v2379_v24 = vmul.f32 0.5, %v2363_v35  ;;  %3553 = vtanh.f32 %v2320_v17  ;;  %v2321_v62 = vmul.f32 0.7978846, %v2305_v45  ;;  %v2413_v17 = vld [vmem:[%s4783_s5 + $0x68] sm:$0xff] }
 0x294   : > { %v2392_v63 = vmul.f32 %v2376_v47, %v4541_v51  ;;  %v2377_v61 = vmul.f32 0.5, %v2361_v21  ;;  %3555 = vtanh.f32 %v2323_v29  ;;  %v2278_v2 = vmul.f32 %v2262_v7, %v4619_v43  ;;  %v2415_v7 = vld [vmem:[%s4783_s5 + $0x78] sm:$0xff] }
 0x295   : > { %v2426_v56 = vadd.f32 %v2410_v41, %v2394_v52  ;;  %v2395_v38 = vmul.f32 %v2379_v24, %v4546_v60  ;;  %3557 = vtanh.f32 %v2321_v62  ;;  %v4646_v51 = vadd.f32 %v4535_v28, %v2170_v55 }
 0x296   : > { %v3544_v39 = vpop.eup %3543  ;;  %v2424_v18 = vadd.f32 %v2408_v44, %v2392_v63  ;;  %v2393_v19 = vmul.f32 %v2377_v61, %v4551_v13  ;;  %v2294_v59 = vmul.f32 0.044715, %v2278_v2  ;;  %v4650_v25 = vadd.f32 %v3234_v46, %v4535_v28 }
 0x297   : > { %v3546_v4 = vpop.eup %3545  ;;  %v2427_v23 = vadd.f32 %v2411_v42, %v2395_v38  ;;  %v2366_v10 = vadd.f32 1.0, %v3544_v39  ;;  %v2260_v60 = vmul.f32 %v4646_v51, %v4646_v51  ;;  %v4655_v0 = vadd.f32 %v4535_v28, %v2173_v15  ;;  %v2414_v28 = vld [vmem:[%s4783_s5 + $0x70] sm:$0xff] }
 0x298   : > { %v3548_v30 = vpop.eup %3547  ;;  %v2425_v32 = vadd.f32 %v2409_v3, %v2393_v19  ;;  %v2364_v20 = vadd.f32 1.0, %v3546_v4  ;;  %v2310_v27 = vadd.f32 %v2294_v59, %v4619_v43  ;;  %v2263_v13 = vmul.f32 %v4650_v25, %v4650_v25  ;;  %v2403_v59 = vld [vmem:[%s4783_s5 + $0x18] sm:$0xff] }
 0x299   : > { %v3550_v50 = vpop.eup %3549  ;;  %v2792_v22 = vpack.c.bf16 %v2427_v23, %v2426_v56  ;;  %v2382_v36 = vmul.f32 0.5, %v2366_v10  ;;  %v2367_v12 = vadd.f32 1.0, %v3548_v30  ;;  %v2276_v53 = vmul.f32 %v2260_v60, %v4646_v51  ;;  %v2400_v10 = vld [vmem:[%s4783_s5] sm:$0xff]  ;;  %v2401_v60 = vld [vmem:[%s4783_s5 + $0x8] sm:$0xff] }
 0x29a   : > { %v2787_v33 = vpack.c.bf16 %v2425_v32, %v2424_v18  ;;  %v2380_v55 = vmul.f32 0.5, %v2364_v20  ;;  %v2365_v31 = vadd.f32 1.0, %v3550_v50  ;;  %v2326_v48 = vmul.f32 0.7978846, %v2310_v27 }
 0x29b   : > { %2808 = vst [vmem:[%s4664_s19 + $0x28] sm:$0xff] %v2792_v22   ;;  %v2398_v8 = vmul.f32 %v2382_v36, %v4563_v57  ;;  %v2383_v46 = vmul.f32 0.5, %v2367_v12  ;;  %v2292_v5 = vmul.f32 0.044715, %v2276_v53  ;;  %v2279_v54 = vmul.f32 %v2263_v13, %v4650_v25 }
 0x29c   : > { %v3552_v6 = vpop.eup %3551  ;;  %2807 = vst [vmem:[%s4664_s19 + $0x20] sm:$0xff] %v2787_v33   ;;  %v2396_v11 = vmul.f32 %v2380_v55, %v4567_v14  ;;  %v2381_v15 = vmul.f32 0.5, %v2365_v31  ;;  %3559 = vtanh.f32 %v2326_v48  ;;  %v2261_v57 = vmul.f32 %v4655_v0, %v4655_v0 }
 0x29d   : > { %v3554_v1 = vpop.eup %3553  ;;  %v2430_v9 = vadd.f32 %v2414_v28, %v2398_v8  ;;  %v2399_v35 = vmul.f32 %v2383_v46, %v4573_v26  ;;  %v2354_v45 = vadd.f32 1.0, %v3552_v6  ;;  %v2308_v14 = vadd.f32 %v2292_v5, %v4646_v51  ;;  %v2406_v46 = vld [vmem:[%s4783_s5 + $0x30] sm:$0xff]  ;;  %v2407_v5 = vld [vmem:[%s4783_s5 + $0x38] sm:$0xff] }
 0x29e   : > { %v3556_v41 = vpop.eup %3555  ;;  %v2428_v47 = vadd.f32 %v2412_v58, %v2396_v11  ;;  %v2397_v21 = vmul.f32 %v2381_v15, %v4579_v16  ;;  %v2352_v29 = vadd.f32 1.0, %v3554_v1  ;;  %v2295_v52 = vmul.f32 0.044715, %v2279_v54  ;;  %v2402_v16 = vld [vmem:[%s4783_s5 + $0x10] sm:$0xff] }
 0x29f   : > { %v3558_v44 = vpop.eup %3557  ;;  %v2431_v24 = vadd.f32 %v2415_v7, %v2399_v35  ;;  %v2370_v62 = vmul.f32 0.5, %v2354_v45  ;;  %v2355_v63 = vadd.f32 1.0, %v3556_v41  ;;  %v2324_v42 = vmul.f32 0.7978846, %v2308_v14  ;;  %v2404_v35 = vld [vmem:[%s4783_s5 + $0x20] sm:$0xff] }
 0x2a0   : > { %v2429_v26 = vadd.f32 %v2413_v17, %v2397_v21  ;;  %v2368_v61 = vmul.f32 0.5, %v2352_v29  ;;  %v2353_v2 = vadd.f32 1.0, %v3558_v44  ;;  %v2311_v56 = vadd.f32 %v2295_v52, %v4650_v25 }
 0x2a1   : > { %v2802_v38 = vpack.c.bf16 %v2431_v24, %v2430_v9  ;;  %v2386_v3 = vmul.f32 %v2370_v62, %v4589_v37  ;;  %v2371_v39 = vmul.f32 0.5, %v2355_v63  ;;  %3561 = vtanh.f32 %v2324_v42 }
 0x2a2   : > { %v2797_v18 = vpack.c.bf16 %v2429_v26, %v2428_v47  ;;  %v2384_v19 = vmul.f32 %v2368_v61, %v4593_v40  ;;  %v2369_v4 = vmul.f32 0.5, %v2353_v2  ;;  %v2327_v23 = vmul.f32 0.7978846, %v2311_v56 }
 0x2a3   : > { %2810 = vst [vmem:[%s4664_s19 + $0x38] sm:$0xff] %v2802_v38   ;;  %v2387_v37 = vmul.f32 %v2371_v39, %v4599_v49  ;;  %v2277_v40 = vmul.f32 %v2261_v57, %v4655_v0  ;;  %v2418_v32 = vadd.f32 %v2402_v16, %v2386_v3 }
 0x2a4   : > { %2809 = vst [vmem:[%s4664_s19 + $0x30] sm:$0xff] %v2797_v18   ;;  %v2385_v30 = vmul.f32 %v2369_v4, %v4605_v34  ;;  %3563 = vtanh.f32 %v2327_v23  ;;  %v2416_v50 = vadd.f32 %v2400_v10, %v2384_v19 }
 0x2a5   : > { %v2419_v20 = vadd.f32 %v2403_v59, %v2387_v37  ;;  %v2293_v27 = vmul.f32 0.044715, %v2277_v40 }
 0x2a6   : > { %v3560_v13 = vpop.eup %3559  ;;  %v2417_v22 = vadd.f32 %v2401_v60, %v2385_v30 }
 0x2a7   : > { %v2772_v49 = vpack.c.bf16 %v2419_v20, %v2418_v32  ;;  %v2309_v36 = vadd.f32 %v2293_v27, %v4655_v0  ;;  %v2358_v53 = vadd.f32 1.0, %v3560_v13 }
 0x2a8   : > { %v2767_v12 = vpack.c.bf16 %v2417_v22, %v2416_v50 }
 0x2a9   : > { %2804 = vst [vmem:[%s4664_s19 + $0x8] sm:$0xff] %v2772_v49   ;;  %v2325_v33 = vmul.f32 0.7978846, %v2309_v36  ;;  %v2374_v55 = vmul.f32 0.5, %v2358_v53 }
 0x2aa   : > { %2768 = vst [vmem:[%s4664_s19] sm:$0xff] %v2767_v12  }
 0x2ab   : > { %3565 = vtanh.f32 %v2325_v33  ;;  %v3562_v28 = vpop.eup %3561  ;;  %v2390_v8 = vmul.f32 %v2374_v55, %v4619_v43 }
 0x2ac   : > { %v2356_v48 = vadd.f32 1.0, %v3562_v28 }
 0x2ad   : > { %v2422_v7 = vadd.f32 %v2406_v46, %v2390_v8 }
 0x2ae   : > { %v3564_v31 = vpop.eup %3563  ;;  %v2372_v6 = vmul.f32 0.5, %v2356_v48 }
 0x2af   : > { %v2359_v34 = vadd.f32 1.0, %v3564_v31 }
 0x2b0   : > { %v2388_v1 = vmul.f32 %v2372_v6, %v4646_v51 }
 0x2b1   : > { %v2375_v58 = vmul.f32 0.5, %v2359_v34 }
 0x2b2   : > { %v2420_v45 = vadd.f32 %v2404_v35, %v2388_v1 }
 0x2b3   : > { %v2391_v54 = vmul.f32 %v2375_v58, %v4650_v25  ;;  %v2405_v25 = vld [vmem:[%s4783_s5 + $0x28] sm:$0xff] }
 0x2b5   : > { %v3566_v11 = vpop.eup %3565  ;;  %v2423_v15 = vadd.f32 %v2407_v5, %v2391_v54 }
 0x2b6   : > { %v2357_v57 = vadd.f32 1.0, %v3566_v11 }
 0x2b7   : > { %v2782_v43 = vpack.c.bf16 %v2423_v15, %v2422_v7 }
 0x2b8   : > { %v2373_v9 = vmul.f32 0.5, %v2357_v57 }
 0x2b9   : > { %2806 = vst [vmem:[%s4664_s19 + $0x18] sm:$0xff] %v2782_v43  }
 0x2ba   : > { %v2389_v17 = vmul.f32 %v2373_v9, %v4655_v0 }
 0x2bc   : > { %v2421_v14 = vadd.f32 %v2405_v25, %v2389_v17 }
 0x2be   : > { %v2777_v51 = vpack.c.bf16 %v2421_v14, %v2420_v45 }
 0x2c0   : > { %2805 = vst [vmem:[%s4664_s19 + $0x10] sm:$0xff] %v2777_v51  }
 0x2c1   : > { %3586 = shalt.err (!%p3583_p3)
}
 0x2c2   : > { %s3587_s9 = scalar_lea.hbm %s4730_s20, 1024  ;;  %s3591_s12 = scalar_lea.hbm %s4784_s6, 2048 }
 0x2c3   : > { %p3588_p4 = scmp.ne.s32.totalorder %s4730_s20, %s3587_s9  ;;  %p3592_p9 = scmp.lt.u32.totalorder %s4730_s20, %s4784_s6 }
 0x2c4   : > { %p3593_p10 = scmp.lt.u32.totalorder %s3591_s12, %s3587_s9  ;;  %p3595_p12 = scmp.lt.u32.totalorder %s3587_s9, %s4730_s20 }
 0x2c5   : > { %p3589_p7 = pnand %p3588_p4, %p3713_p5 }
 0x2c6   : > { %p3594_p11 = por %p3593_p10, %p3592_p9 }
 0x2c7   : > { %p3590_p8 = pneg %p3589_p7 }
 0x2c8   : > { %p3596_p13 = por %p3595_p12, %p3594_p11 }
 0x2ca   : > { %p3597_p0 = pnand %p3596_p13, %p3590_p8 }
 0x2cc   : > { %3600 = shalt.err (!%p3597_p0)
}
 0x2cd   : > { %s3638_s15 = smov 64   ;;  %s3639_s17 = smov 4  }
 0x2ce   : > { %3356 = dma.vmem_to_hbm [thread:$0]  (%p3713_p5), %s4732_s16, 1024, %s4730_s20, %s4737_s26, %s3638_s15, %s3638_s15, %s3639_s17  }
 0x2cf PF: > { %p3362_p1 = scmp.ge.s32.totalorder %s3635_s24, 2  ;;  %s2541_s18 = sand.u32 1, %s3623_s21  }
 0x2d0   : > { %s2542_s28 = scalar_lea.sflag [#allocation3], %s2541_s18 }
 0x2d1   : > { %p3359_p2 = pnand %p3362_p1, %p3717_p6 }
 0x2d3   : > { %3618 = dma.done.wait (!%p3359_p2), %s2542_s28, 1024  }
 0x2d4   : > { %3620 = vsyncadd (!%p3359_p2), %s2542_s28, 4294966272  ;;  %p16_p3 = scmp.ge.s32.totalorder %s3700_s27, 4   ;;  %s4789_s21 = smov %s3627_s22 }
 0x2d5   : > { %s4790_s22 = smov %s3631_s23  ;;  %s4791_s23 = smov %s3711_s30 }
 0x2d6   : > { %s4792_s24 = smov %s3700_s27  ;;  %18 = sbr.rel (!%p16_p3) target bundleno = 3 (0x3), region = 83 }
 0x2dd   :  { %2547 = vsyncpa [#allocation3], 1 }
 0x2de   :  { %2549 = vsyncpa [#allocation3 + $0x1], 1 }

</bundles_post_ra>
